<compile_context>
chip_gen: v7x
topology: tpu7x:2x2x1
jax: 0.10.0
libtpu: 0.0.40
codegen_flags: <defaults>
</compile_context>

<pallas_src>
import jax
import jax.numpy as jnp
from jax.experimental import pallas as pl
from jax.experimental.pallas import tpu as pltpu


def _round_up(x, m):
    return (x + m - 1) // m * m


def _fc_tiling(o):
    """Lane-dense output padding and the largest sensible O tile (<=2048)."""
    o128 = _round_up(o, 128)
    to = min(o128, 2048)
    o_pad = _round_up(o128, to)
    return o_pad, to


def _const_spec(shape):
    """Full-array block with a constant index map (DMA'd once, VMEM-resident)."""
    n = len(shape)
    return pl.BlockSpec(shape, lambda j, n=n: (0,) * n)


# ---------------------------------------------------------------------------
# Fused kernel: attention + LSTM cell (grid step 0) + tiled vocab projection.
# ---------------------------------------------------------------------------
def decoder_step_kernel(emb_ref, h_ref, c_ref, enc_ref, encp_ref,
                        wah_ref, v_ref, wg_ref, bg_ref, wfc_ref, bfc_ref,
                        hout_ref, cout_ref, preds_ref, hbf_ref):
    @pl.when(pl.program_id(0) == 0)
    def _attn_lstm():
        h = h_ref[...]                       # [Bp, H]   f32
        c = c_ref[...]                       # [Bp, H]   f32
        emb = emb_ref[...]                   # [Bp, E]   bf16
        enc = enc_ref[...]                   # [Bp, S, 2H] bf16
        encp = encp_ref[...]                 # [Bp, S, H]  f32  (enc @ W_ae + b_a, precomputed)
        Bp, S, H2 = enc.shape
        H = h.shape[1]

        h_bf = h.astype(jnp.bfloat16)

        # ---- attention energy: tanh(h @ W_ah + (enc @ W_ae + b_a)) ----
        h_part = jnp.dot(h_bf, wah_ref[...],
                         preferred_element_type=jnp.float32)            # [Bp, H]
        energy = jnp.tanh(h_part[:, None, :] + encp)                    # [Bp, S, H] f32

        # ---- scores = v . energy : VPU multiply + lane reduce (no q=1 matmul) ----
        v_row = v_ref[...].reshape(1, 1, H)                             # [1,1,H] f32
        scores = jnp.sum(energy * v_row, axis=-1)                       # [Bp, S]

        # ---- softmax over src_len (f32, approx reciprocal on the EUP) ----
        scores = scores - jnp.max(scores, axis=-1, keepdims=True)
        ex = jnp.exp(scores)
        a = ex * pl.reciprocal(jnp.sum(ex, axis=-1, keepdims=True), approx=True)  # [Bp, S]

        # ---- weighted context: broadcast-mul + sublane reduce over S ----
        weighted = jnp.sum(a[:, :, None] * enc.astype(jnp.float32), axis=1)       # [Bp, 2H]

        # ---- single fused gate matmul (PyTorch gate order i, f, g, o) ----
        lstm_in = jnp.concatenate(
            [emb, weighted.astype(jnp.bfloat16), h_bf], axis=-1)        # [Bp, E+3H] bf16
        gates = (jnp.dot(lstm_in, wg_ref[...],
                         preferred_element_type=jnp.float32)
                 + bg_ref[...])                                          # [Bp, 4H] f32
        i_g = jax.nn.sigmoid(gates[:, 0 * H:1 * H])
        f_g = jax.nn.sigmoid(gates[:, 1 * H:2 * H])
        g_g = jnp.tanh(gates[:, 2 * H:3 * H])
        o_g = jax.nn.sigmoid(gates[:, 3 * H:4 * H])
        c_new = f_g * c + i_g * g_g
        h_new = o_g * jnp.tanh(c_new)

        hout_ref[...] = h_new
        cout_ref[...] = c_new
        hbf_ref[...] = h_new.astype(jnp.bfloat16)       # cast once, reused by all fc tiles

    # ---- one fc vocab tile per grid step (weight streamed / double-buffered) ----
    preds_ref[...] = (jnp.dot(hbf_ref[...], wfc_ref[...],
                              preferred_element_type=jnp.float32)
                      + bfc_ref[...])


# ---------------------------------------------------------------------------
# Step-invariant preparation (call ONCE, outside the decode loop).
# ---------------------------------------------------------------------------
def prepare_params(params):
    bf = jnp.bfloat16
    H = params["lstm_Whh"].shape[1]
    E = params["embedding"].shape[1]
    O = params["fc_W"].shape[0]
    O_pad, TO = _fc_tiling(O)

    W_a = params["attn_W"]                               # [H, 3H] ; cols = [hidden | enc(2H)]
    W_ih = params["lstm_Wih"]                            # [4H, E+2H] ; cols = [emb | weighted(2H)]

    # Fused LSTM gate weight: rows = [emb (E) | weighted (2H) | hidden (H)]
    w_gates = jnp.concatenate(
        [W_ih[:, :E].T, W_ih[:, E:].T, params["lstm_Whh"].T], axis=0).astype(bf)   # [E+3H, 4H]

    wfc = params["fc_W"].T                               # [H, O]
    wfc = jnp.pad(wfc, ((0, 0), (0, O_pad - O))).astype(bf)
    bfc = jnp.pad(params["fc_b"], (0, O_pad - O))[None, :]

    return {
        "emb_table": params["embedding"].astype(bf),     # [V, E]
        # attention
        "wah": W_a[:, :H].T.astype(bf),                  # [H, H]   hidden part (kernel matmul)
        "wae": W_a[:, H:].T,                             # [2H, H]  f32 encoder part (precompute)
        "ba": params["attn_b"],                          # [H]      f32 (folded into enc projection)
        "v": params["attn_v"].astype(jnp.float32),       # [1, H]   f32 (VPU mul, not MXU)
        # fused LSTM
        "w_gates": w_gates,                              # [E+3H, 4H] bf16
        "b_gates": (params["lstm_bih"] + params["lstm_bhh"])[None, :],   # [1, 4H] f32
        # output projection (padded to lane-dense O_pad)
        "wfc": wfc,                                      # [H, O_pad] bf16
        "bfc": bfc,                                      # [1, O_pad] f32
        "emb_size": int(E),
        "hidden_size": int(H),
        "out_features": int(O),
        "o_pad": int(O_pad),
        "o_tile": int(TO),
    }


def prepare_encoder(encoder_outputs, prep):
    """Per-source-sequence precompute: batch-major transpose + encoder-side
    attention projection + batch padding (Bp multiple of 16 for bf16 MXU LHS)."""
    enc_bm = jnp.transpose(encoder_outputs, (1, 0, 2))                       # [B, S, 2H]
    enc_proj = jnp.einsum('bsh,hk->bsk', enc_bm, prep["wae"]) + prep["ba"]   # [B, S, H] f32
    B = enc_bm.shape[0]
    Bp = _round_up(B, 16)
    pad = Bp - B
    enc_bm = jnp.pad(enc_bm, ((0, pad), (0, 0), (0, 0))).astype(jnp.bfloat16)
    # NOTE: enc_proj could be stored bf16 on v5e to halve the dominant HBM stream.
    enc_proj = jnp.pad(enc_proj, ((0, pad), (0, 0), (0, 0)))
    return enc_bm, enc_proj


def init_state(hidden, cell, Bp):
    """Pad (1,B,H) LSTM state ONCE to the (Bp,H) layout carried across the loop."""
    B = hidden.shape[1]
    pad = Bp - B
    h = jnp.pad(hidden[0], ((0, pad), (0, 0)))
    c = jnp.pad(cell[0], ((0, pad), (0, 0)))
    return h, c


# ---------------------------------------------------------------------------
# Per-decode-step forward (padded layout; one fused pallas_call).
# ---------------------------------------------------------------------------
def decoder_step(x_tokens, h_pad, c_pad, enc_bm, enc_proj, prep):
    """
    x_tokens:      [B]  int32
    h_pad, c_pad:  [Bp, H] f32 (padded, threaded across the decode loop)
    enc_bm:        [Bp, S, 2H] bf16
    enc_proj:      [Bp, S, H]  f32
    returns: preds_pad [Bp, O_pad], h_pad [Bp,H], c_pad [Bp,H]
    """
    Bp, S, H2 = enc_bm.shape
    H = prep["hidden_size"]
    E = prep["emb_size"]
    O_pad = prep["o_pad"]
    TO = prep["o_tile"]
    B = x_tokens.shape[0]

    # embedding lookup (dropout == identity in eval mode); pad tokens, not the table
    x_padded = jnp.pad(x_tokens, (0, Bp - B))
    emb = jnp.take(prep["emb_table"], x_padded, axis=0)                  # [Bp, E] bf16

    h_new, c_new, preds_pad = pl.pallas_call(
        decoder_step_kernel,
        out_shape=(
            jax.ShapeDtypeStruct((Bp, H), jnp.float32),
            jax.ShapeDtypeStruct((Bp, H), jnp.float32),
            jax.ShapeDtypeStruct((Bp, O_pad), jnp.float32),
        ),
        grid=(O_pad // TO,),
        in_specs=[
            _const_spec((Bp, E)),               # emb
            _const_spec((Bp, H)),               # h
            _const_spec((Bp, H)),               # c
            _const_spec((Bp, S, H2)),           # enc_bm
            _const_spec((Bp, S, H)),            # enc_proj
            _const_spec((H, H)),                # wah
            _const_spec((1, H)),                # v
            _const_spec((E + 3 * H, 4 * H)),    # w_gates (fused)
            _const_spec((1, 4 * H)),            # b_gates
            pl.BlockSpec((H, TO), lambda j: (0, j)),   # wfc tile (streamed)
            pl.BlockSpec((1, TO), lambda j: (0, j)),   # bfc tile
        ],
        out_specs=(
            _const_spec((Bp, H)),               # h_new  (resident, written at j==0)
            _const_spec((Bp, H)),               # c_new  (resident, written at j==0)
            pl.BlockSpec((Bp, TO), lambda j: (0, j)),  # preds tile
        ),
        scratch_shapes=[pltpu.VMEM((Bp, H), jnp.bfloat16)],   # h_new in bf16, cast once
        compiler_params=pltpu.CompilerParams(
            dimension_semantics=("arbitrary",),
            vmem_limit_bytes=48 * 1024 * 1024,
        ),
    )(emb, h_pad, c_pad, enc_bm, enc_proj,
      prep["wah"], prep["v"], prep["w_gates"], prep["b_gates"],
      prep["wfc"], prep["bfc"])

    return preds_pad, h_new, c_new


def decoder_forward(x_tokens, hidden, cell, encoder_outputs, params):
    """Module-equivalent convenience wrapper (prepare + one step + un-pad)."""
    prep = prepare_params(params)
    enc_bm, enc_proj = prepare_encoder(encoder_outputs, prep)
    B = x_tokens.shape[0]
    h_pad, c_pad = init_state(hidden, cell, enc_bm.shape[0])
    preds_pad, h_pad, c_pad = decoder_step(x_tokens, h_pad, c_pad, enc_bm, enc_proj, prep)
    preds = preds_pad[:B, :prep["out_features"]]
    return preds, h_pad[:B][None], c_pad[:B][None]


# ---------------------------------------------------------------------------
# Deterministic synthetic parameter init (shapes from Decoder.__init__).
# ---------------------------------------------------------------------------
def init_params(key, input_size, emb_size, hidden_size, output_size):
    H, E = hidden_size, emb_size
    ks = jax.random.split(key, 10)
    s = 0.1
    return {
        "embedding": jax.random.normal(ks[0], (input_size, E), jnp.float32) * s,
        "attn_W":    jax.random.normal(ks[1], (H, 3 * H), jnp.float32) * s,
        "attn_b":    jax.random.normal(ks[2], (H,), jnp.float32) * s,
        "attn_v":    jax.random.normal(ks[3], (1, H), jnp.float32) * s,
        "lstm_Wih":  jax.random.normal(ks[4], (4 * H, 2 * H + E), jnp.float32) * s,
        "lstm_Whh":  jax.random.normal(ks[5], (4 * H, H), jnp.float32) * s,
        "lstm_bih":  jax.random.normal(ks[6], (4 * H,), jnp.float32) * s,
        "lstm_bhh":  jax.random.normal(ks[7], (4 * H,), jnp.float32) * s,
        "fc_W":      jax.random.normal(ks[8], (output_size, H), jnp.float32) * s,
        "fc_b":      jax.random.normal(ks[9], (output_size,), jnp.float32) * s,
    }


if __name__ == "__main__":
    B, S, H, E = 2, 8, 32, 16
    INPUT_SIZE = OUTPUT_SIZE = 50

    key = jax.random.PRNGKey(0)
    kp, kx, kh, kc, ke = jax.random.split(key, 5)

    params = init_params(kp, INPUT_SIZE, E, H, OUTPUT_SIZE)

    x = jax.random.randint(kx, (B,), 0, INPUT_SIZE, dtype=jnp.int32)       # token ids
    hidden = jax.random.normal(kh, (1, B, H), jnp.float32) * 0.1           # LSTM h0
    cell = jax.random.normal(kc, (1, B, H), jnp.float32) * 0.1             # LSTM c0
    encoder_outputs = jax.random.normal(ke, (S, B, 2 * H), jnp.float32) * 0.1

    # Step-invariant prep done once (weights, encoder projection, state padding).
    prep = prepare_params(params)
    enc_bm, enc_proj = prepare_encoder(encoder_outputs, prep)
    h_pad, c_pad = init_state(hidden, cell, enc_bm.shape[0])

    # Two decode steps threading padded LSTM state (as a decode loop would);
    # un-padding of preds is deferred to the end of decoding.
    preds_pad, h_pad, c_pad = decoder_step(x, h_pad, c_pad, enc_bm, enc_proj, prep)
    preds_pad, h_pad, c_pad = decoder_step(x, h_pad, c_pad, enc_bm, enc_proj, prep)
    preds = preds_pad[:B, :prep["out_features"]]
    hidden_out = h_pad[:B][None]
    cell_out = c_pad[:B][None]
    jax.block_until_ready((preds, hidden_out, cell_out))

    assert preds.shape == (B, OUTPUT_SIZE)
    assert hidden_out.shape == (1, B, H)
    assert cell_out.shape == (1, B, H)
    assert bool(jnp.all(jnp.isfinite(preds)))

    # Module-equivalent single-call wrapper exercised once as well.
    p2, h2, c2 = decoder_forward(x, hidden_out, cell_out, encoder_outputs, params)
    jax.block_until_ready((p2, h2, c2))
    assert p2.shape == (B, OUTPUT_SIZE)
    assert bool(jnp.all(jnp.isfinite(p2)))

    print("KERNEL_OK")
</pallas_src>

<mosaic_0001>
module attributes {stable_mosaic.version = 11 : i64} {
  func.func @decoder_step_kernel(%arg0: i32, %arg1: memref<16x16xbf16, #tpu.memory_space<vmem>>, %arg2: memref<16x32xf32, #tpu.memory_space<vmem>>, %arg3: memref<16x32xf32, #tpu.memory_space<vmem>>, %arg4: memref<16x8x64xbf16, #tpu.memory_space<vmem>>, %arg5: memref<16x8x32xf32, #tpu.memory_space<vmem>>, %arg6: memref<32x32xbf16, #tpu.memory_space<vmem>>, %arg7: memref<1x32xf32, #tpu.memory_space<vmem>>, %arg8: memref<112x128xbf16, #tpu.memory_space<vmem>>, %arg9: memref<1x128xf32, #tpu.memory_space<vmem>>, %arg10: memref<32x128xbf16, #tpu.memory_space<vmem>>, %arg11: memref<1x128xf32, #tpu.memory_space<vmem>>, %arg12: memref<16x32xf32, #tpu.memory_space<vmem>>, %arg13: memref<16x32xf32, #tpu.memory_space<vmem>>, %arg14: memref<16x128xf32, #tpu.memory_space<vmem>>, %arg15: memref<16x32xbf16, #tpu.memory_space<vmem>>) attributes {dimension_semantics = [#tpu.dimension_semantics<arbitrary>], iteration_bounds = array<i64: 1>, scalar_prefetch = 0 : i64, scratch_operands = 1 : i64, tpu.core_type = #tpu.core_type<tc>, window_params = [{pipeline_mode = #tpu.pipeline_mode<synchronous>, transform_indices = @transform_0, window_bounds = array<i64: 16, 16>}, {pipeline_mode = #tpu.pipeline_mode<synchronous>, transform_indices = @transform_1, window_bounds = array<i64: 16, 32>}, {pipeline_mode = #tpu.pipeline_mode<synchronous>, transform_indices = @transform_2, window_bounds = array<i64: 16, 32>}, {pipeline_mode = #tpu.pipeline_mode<synchronous>, transform_indices = @transform_3, window_bounds = array<i64: 16, 8, 64>}, {pipeline_mode = #tpu.pipeline_mode<synchronous>, transform_indices = @transform_4, window_bounds = array<i64: 16, 8, 32>}, {pipeline_mode = #tpu.pipeline_mode<synchronous>, transform_indices = @transform_5, window_bounds = array<i64: 32, 32>}, {pipeline_mode = #tpu.pipeline_mode<synchronous>, transform_indices = @transform_6, window_bounds = array<i64: 1, 32>}, {pipeline_mode = #tpu.pipeline_mode<synchronous>, transform_indices = @transform_7, window_bounds = array<i64: 112, 128>}, {pipeline_mode = #tpu.pipeline_mode<synchronous>, transform_indices = @transform_8, window_bounds = array<i64: 1, 128>}, {transform_indices = @transform_9, window_bounds = array<i64: 32, 128>}, {transform_indices = @transform_10, window_bounds = array<i64: 1, 128>}, {pipeline_mode = #tpu.pipeline_mode<synchronous>, transform_indices = @transform_11, window_bounds = array<i64: 16, 32>}, {pipeline_mode = #tpu.pipeline_mode<synchronous>, transform_indices = @transform_12, window_bounds = array<i64: 16, 32>}, {transform_indices = @transform_13, window_bounds = array<i64: 16, 128>}]} {
    %c0_i32 = arith.constant 0 : i32
    %0 = arith.cmpi eq, %arg0, %c0_i32 : i32
    %1 = arith.extui %0 : i1 to i32
    %c0_i32_0 = arith.constant 0 : i32
    %2 = arith.cmpi ne, %1, %c0_i32_0 : i32
    scf.if %2 {
      %c0_8 = arith.constant 0 : index
      %c0_9 = arith.constant 0 : index
      %10 = vector.load %arg2[%c0_8, %c0_9] : memref<16x32xf32, #tpu.memory_space<vmem>>, vector<16x32xf32>
      %c0_10 = arith.constant 0 : index
      %c0_11 = arith.constant 0 : index
      %11 = vector.load %arg3[%c0_10, %c0_11] : memref<16x32xf32, #tpu.memory_space<vmem>>, vector<16x32xf32>
      %c0_12 = arith.constant 0 : index
      %c0_13 = arith.constant 0 : index
      %12 = vector.load %arg1[%c0_12, %c0_13] : memref<16x16xbf16, #tpu.memory_space<vmem>>, vector<16x16xbf16>
      %c0_14 = arith.constant 0 : index
      %c0_15 = arith.constant 0 : index
      %c0_16 = arith.constant 0 : index
      %13 = vector.load %arg4[%c0_14, %c0_15, %c0_16] : memref<16x8x64xbf16, #tpu.memory_space<vmem>>, vector<16x8x64xbf16>
      %c0_17 = arith.constant 0 : index
      %c0_18 = arith.constant 0 : index
      %c0_19 = arith.constant 0 : index
      %14 = vector.load %arg5[%c0_17, %c0_18, %c0_19] : memref<16x8x32xf32, #tpu.memory_space<vmem>>, vector<16x8x32xf32>
      %15 = arith.truncf %10 : vector<16x32xf32> to vector<16x32xbf16>
      %c0_20 = arith.constant 0 : index
      %c0_21 = arith.constant 0 : index
      %16 = vector.load %arg6[%c0_20, %c0_21] : memref<32x32xbf16, #tpu.memory_space<vmem>>, vector<32x32xbf16>
      %cst_22 = arith.constant dense<0.000000e+00> : vector<16x32xf32>
      %17 = tpu.matmul %15, %16, %cst_22 {dimension_numbers = #tpu.dot_dimension_numbers<[1], [0], [0], [1], [0, 0, 1, 1], [], []>} : vector<16x32xbf16>, vector<32x32xbf16>, vector<16x32xf32> -> vector<16x32xf32>
      %18 = vector.shape_cast %17 : vector<16x32xf32> to vector<16x1x32xf32>
      %19 = vector.broadcast %18 : vector<16x1x32xf32> to vector<16x8x32xf32>
      %20 = arith.addf %19, %14 : vector<16x8x32xf32>
      %21 = math.tanh %20 : vector<16x8x32xf32>
      %c0_23 = arith.constant 0 : index
      %c0_24 = arith.constant 0 : index
      %22 = vector.load %arg7[%c0_23, %c0_24] : memref<1x32xf32, #tpu.memory_space<vmem>>, vector<1x32xf32>
      %23 = vector.shape_cast %22 : vector<1x32xf32> to vector<1x1x32xf32>
      %24 = vector.broadcast %23 : vector<1x1x32xf32> to vector<16x8x32xf32>
      %25 = arith.mulf %21, %24 : vector<16x8x32xf32>
      %cst_25 = arith.constant dense<0.000000e+00> : vector<16x8xf32>
      %26 = vector.multi_reduction <add>, %25, %cst_25 [2] : vector<16x8x32xf32> to vector<16x8xf32>
      %cst_26 = arith.constant dense<0xFF800000> : vector<16xf32>
      %27 = vector.multi_reduction <maximumf>, %26, %cst_26 [1] : vector<16x8xf32> to vector<16xf32>
      %28 = vector.shape_cast %27 : vector<16xf32> to vector<16x1xf32>
      %29 = vector.broadcast %28 : vector<16x1xf32> to vector<16x8xf32>
      %30 = arith.subf %26, %29 : vector<16x8xf32>
      %31 = math.exp %30 : vector<16x8xf32>
      %cst_27 = arith.constant dense<0.000000e+00> : vector<16xf32>
      %32 = vector.multi_reduction <add>, %31, %cst_27 [1] : vector<16x8xf32> to vector<16xf32>
      %33 = vector.shape_cast %32 : vector<16xf32> to vector<16x1xf32>
      %34 = tpu.reciprocal %33 {approx = true} : vector<16x1xf32> -> vector<16x1xf32>
      %35 = vector.broadcast %34 : vector<16x1xf32> to vector<16x8xf32>
      %36 = arith.mulf %31, %35 : vector<16x8xf32>
      %37 = vector.shape_cast %36 : vector<16x8xf32> to vector<16x8x1xf32>
      %38 = arith.extf %13 : vector<16x8x64xbf16> to vector<16x8x64xf32>
      %39 = vector.broadcast %37 : vector<16x8x1xf32> to vector<16x8x64xf32>
      %40 = arith.mulf %39, %38 : vector<16x8x64xf32>
      %cst_28 = arith.constant dense<0.000000e+00> : vector<16x64xf32>
      %41 = vector.multi_reduction <add>, %40, %cst_28 [1] : vector<16x8x64xf32> to vector<16x64xf32>
      %42 = arith.truncf %41 : vector<16x64xf32> to vector<16x64xbf16>
      %43 = tpu.concatenate %12, %42, %15 in 1 : vector<16x16xbf16>, vector<16x64xbf16>, vector<16x32xbf16> -> vector<16x112xbf16>
      %c0_29 = arith.constant 0 : index
      %c0_30 = arith.constant 0 : index
      %44 = vector.load %arg8[%c0_29, %c0_30] : memref<112x128xbf16, #tpu.memory_space<vmem>>, vector<112x128xbf16>
      %cst_31 = arith.constant dense<0.000000e+00> : vector<16x128xf32>
      %45 = tpu.matmul %43, %44, %cst_31 {dimension_numbers = #tpu.dot_dimension_numbers<[1], [0], [0], [1], [0, 0, 1, 1], [], []>} : vector<16x112xbf16>, vector<112x128xbf16>, vector<16x128xf32> -> vector<16x128xf32>
      %c0_32 = arith.constant 0 : index
      %c0_33 = arith.constant 0 : index
      %46 = vector.load %arg9[%c0_32, %c0_33] : memref<1x128xf32, #tpu.memory_space<vmem>>, vector<1x128xf32>
      %47 = vector.broadcast %46 : vector<1x128xf32> to vector<16x128xf32>
      %48 = arith.addf %45, %47 : vector<16x128xf32>
      %49 = vector.extract_strided_slice %48 {offsets = [0, 0], sizes = [16, 32], strides = [1, 1]} : vector<16x128xf32> to vector<16x32xf32>
      %50 = arith.negf %49 : vector<16x32xf32>
      %51 = math.exp %50 : vector<16x32xf32>
      %cst_34 = arith.constant 1.000000e+00 : f32
      %52 = vector.broadcast %cst_34 : f32 to vector<16x32xf32>
      %53 = arith.addf %52, %51 : vector<16x32xf32>
      %54 = arith.divf %52, %53 : vector<16x32xf32>
      %55 = vector.extract_strided_slice %48 {offsets = [0, 32], sizes = [16, 32], strides = [1, 1]} : vector<16x128xf32> to vector<16x32xf32>
      %56 = arith.negf %55 : vector<16x32xf32>
      %57 = math.exp %56 : vector<16x32xf32>
      %cst_35 = arith.constant 1.000000e+00 : f32
      %58 = vector.broadcast %cst_35 : f32 to vector<16x32xf32>
      %59 = arith.addf %58, %57 : vector<16x32xf32>
      %60 = arith.divf %58, %59 : vector<16x32xf32>
      %61 = vector.extract_strided_slice %48 {offsets = [0, 64], sizes = [16, 32], strides = [1, 1]} : vector<16x128xf32> to vector<16x32xf32>
      %62 = math.tanh %61 : vector<16x32xf32>
      %63 = vector.extract_strided_slice %48 {offsets = [0, 96], sizes = [16, 32], strides = [1, 1]} : vector<16x128xf32> to vector<16x32xf32>
      %64 = arith.negf %63 : vector<16x32xf32>
      %65 = math.exp %64 : vector<16x32xf32>
      %cst_36 = arith.constant 1.000000e+00 : f32
      %66 = vector.broadcast %cst_36 : f32 to vector<16x32xf32>
      %67 = arith.addf %66, %65 : vector<16x32xf32>
      %68 = arith.divf %66, %67 : vector<16x32xf32>
      %69 = arith.mulf %60, %11 : vector<16x32xf32>
      %70 = arith.mulf %54, %62 : vector<16x32xf32>
      %71 = arith.addf %69, %70 : vector<16x32xf32>
      %72 = math.tanh %71 : vector<16x32xf32>
      %73 = arith.mulf %68, %72 : vector<16x32xf32>
      %c0_37 = arith.constant 0 : index
      %c0_38 = arith.constant 0 : index
      %74 = vector.load %arg12[%c0_37, %c0_38] : memref<16x32xf32, #tpu.memory_space<vmem>>, vector<16x32xf32>
      tpu.vector_store %arg12[%c0_37, %c0_38], %73 {strides = array<i32>} : memref<16x32xf32, #tpu.memory_space<vmem>>, vector<16x32xf32>,
      %c0_39 = arith.constant 0 : index
      %c0_40 = arith.constant 0 : index
      %75 = vector.load %arg13[%c0_39, %c0_40] : memref<16x32xf32, #tpu.memory_space<vmem>>, vector<16x32xf32>
      tpu.vector_store %arg13[%c0_39, %c0_40], %71 {strides = array<i32>} : memref<16x32xf32, #tpu.memory_space<vmem>>, vector<16x32xf32>,
      %76 = arith.truncf %73 : vector<16x32xf32> to vector<16x32xbf16>
      %c0_41 = arith.constant 0 : index
      %c0_42 = arith.constant 0 : index
      %77 = vector.load %arg15[%c0_41, %c0_42] : memref<16x32xbf16, #tpu.memory_space<vmem>>, vector<16x32xbf16>
      tpu.vector_store %arg15[%c0_41, %c0_42], %76 {strides = array<i32>} : memref<16x32xbf16, #tpu.memory_space<vmem>>, vector<16x32xbf16>,
    } else {
    }
    %c0 = arith.constant 0 : index
    %c0_1 = arith.constant 0 : index
    %3 = vector.load %arg15[%c0, %c0_1] : memref<16x32xbf16, #tpu.memory_space<vmem>>, vector<16x32xbf16>
    %c0_2 = arith.constant 0 : index
    %c0_3 = arith.constant 0 : index
    %4 = vector.load %arg10[%c0_2, %c0_3] : memref<32x128xbf16, #tpu.memory_space<vmem>>, vector<32x128xbf16>
    %cst = arith.constant dense<0.000000e+00> : vector<16x128xf32>
    %5 = tpu.matmul %3, %4, %cst {dimension_numbers = #tpu.dot_dimension_numbers<[1], [0], [0], [1], [0, 0, 1, 1], [], []>} : vector<16x32xbf16>, vector<32x128xbf16>, vector<16x128xf32> -> vector<16x128xf32>
    %c0_4 = arith.constant 0 : index
    %c0_5 = arith.constant 0 : index
    %6 = vector.load %arg11[%c0_4, %c0_5] : memref<1x128xf32, #tpu.memory_space<vmem>>, vector<1x128xf32>
    %7 = vector.broadcast %6 : vector<1x128xf32> to vector<16x128xf32>
    %8 = arith.addf %5, %7 : vector<16x128xf32>
    %c0_6 = arith.constant 0 : index
    %c0_7 = arith.constant 0 : index
    %9 = vector.load %arg14[%c0_6, %c0_7] : memref<16x128xf32, #tpu.memory_space<vmem>>, vector<16x128xf32>
    tpu.vector_store %arg14[%c0_6, %c0_7], %8 {strides = array<i32>} : memref<16x128xf32, #tpu.memory_space<vmem>>, vector<16x128xf32>,
    return
  }
  func.func @transform_0(%arg0: i32) -> (i32, i32) {
    %c0_i32 = arith.constant 0 : i32
    %c0_i32_0 = arith.constant 0 : i32
    %c0_i32_1 = arith.constant 0 : i32
    return %c0_i32, %c0_i32_0 : i32, i32
  }
  func.func @transform_1(%arg0: i32) -> (i32, i32) {
    %c0_i32 = arith.constant 0 : i32
    %c0_i32_0 = arith.constant 0 : i32
    %c0_i32_1 = arith.constant 0 : i32
    return %c0_i32, %c0_i32_0 : i32, i32
  }
  func.func @transform_2(%arg0: i32) -> (i32, i32) {
    %c0_i32 = arith.constant 0 : i32
    %c0_i32_0 = arith.constant 0 : i32
    %c0_i32_1 = arith.constant 0 : i32
    return %c0_i32, %c0_i32_0 : i32, i32
  }
  func.func @transform_3(%arg0: i32) -> (i32, i32, i32) {
    %c0_i32 = arith.constant 0 : i32
    %c0_i32_0 = arith.constant 0 : i32
    %c0_i32_1 = arith.constant 0 : i32
    %c0_i32_2 = arith.constant 0 : i32
    return %c0_i32, %c0_i32_0, %c0_i32_1 : i32, i32, i32
  }
  func.func @transform_4(%arg0: i32) -> (i32, i32, i32) {
    %c0_i32 = arith.constant 0 : i32
    %c0_i32_0 = arith.constant 0 : i32
    %c0_i32_1 = arith.constant 0 : i32
    %c0_i32_2 = arith.constant 0 : i32
    return %c0_i32, %c0_i32_0, %c0_i32_1 : i32, i32, i32
  }
  func.func @transform_5(%arg0: i32) -> (i32, i32) {
    %c0_i32 = arith.constant 0 : i32
    %c0_i32_0 = arith.constant 0 : i32
    %c0_i32_1 = arith.constant 0 : i32
    return %c0_i32, %c0_i32_0 : i32, i32
  }
  func.func @transform_6(%arg0: i32) -> (i32, i32) {
    %c0_i32 = arith.constant 0 : i32
    %c0_i32_0 = arith.constant 0 : i32
    %c0_i32_1 = arith.constant 0 : i32
    return %c0_i32, %c0_i32_0 : i32, i32
  }
  func.func @transform_7(%arg0: i32) -> (i32, i32) {
    %c0_i32 = arith.constant 0 : i32
    %c0_i32_0 = arith.constant 0 : i32
    %c0_i32_1 = arith.constant 0 : i32
    return %c0_i32, %c0_i32_0 : i32, i32
  }
  func.func @transform_8(%arg0: i32) -> (i32, i32) {
    %c0_i32 = arith.constant 0 : i32
    %c0_i32_0 = arith.constant 0 : i32
    %c0_i32_1 = arith.constant 0 : i32
    return %c0_i32, %c0_i32_0 : i32, i32
  }
  func.func @transform_9(%arg0: i32) -> (i32, i32) {
    %c0_i32 = arith.constant 0 : i32
    %c0_i32_0 = arith.constant 0 : i32
    return %c0_i32, %arg0 : i32, i32
  }
  func.func @transform_10(%arg0: i32) -> (i32, i32) {
    %c0_i32 = arith.constant 0 : i32
    %c0_i32_0 = arith.constant 0 : i32
    return %c0_i32, %arg0 : i32, i32
  }
  func.func @transform_11(%arg0: i32) -> (i32, i32) {
    %c0_i32 = arith.constant 0 : i32
    %c0_i32_0 = arith.constant 0 : i32
    %c0_i32_1 = arith.constant 0 : i32
    return %c0_i32, %c0_i32_0 : i32, i32
  }
  func.func @transform_12(%arg0: i32) -> (i32, i32) {
    %c0_i32 = arith.constant 0 : i32
    %c0_i32_0 = arith.constant 0 : i32
    %c0_i32_1 = arith.constant 0 : i32
    return %c0_i32, %c0_i32_0 : i32, i32
  }
  func.func @transform_13(%arg0: i32) -> (i32, i32) {
    %c0_i32 = arith.constant 0 : i32
    %c0_i32_0 = arith.constant 0 : i32
    return %c0_i32, %arg0 : i32, i32
  }
}

</mosaic_0001>

<bundles_post_ra>
// kernel: tpu_custom_call.1
= control target key start
LH: loop header
LB: loop body
LE: loop exit
PB: predicated region body
PF: predicated region fallthrough
CT: control target
= control target key end

     0   :  { %19 = vsyncpa [#allocation4], 0  ;;  %s2731_s0 = inlined_call_operand.hbm [shape: bf16[16,16], index: 0, kind: input, shape index: {}]   ;;  %s2732_s1 = inlined_call_operand.hbm [shape: f32[16,32], index: 1, kind: input, shape index: {}]   ;;  %s2733_s2 = inlined_call_operand.hbm [shape: f32[16,32], index: 2, kind: input, shape index: {}]   ;;  %s2734_s3 = inlined_call_operand.hbm [shape: bf16[16,8,64], index: 3, kind: input, shape index: {}]   ;;  %s2735_s4 = inlined_call_operand.hbm [shape: f32[16,8,32], index: 4, kind: input, shape index: {}]   ;;  %s2736_s5 = inlined_call_operand.vmem [shape: bf16[32,32], index: 5, kind: input, shape index: {}]   ;;  %s2737_s6 = inlined_call_operand.vmem [shape: f32[1,32], index: 6, kind: input, shape index: {}]   ;;  %s2738_s7 = inlined_call_operand.hbm [shape: bf16[112,128], index: 7, kind: input, shape index: {}]   ;;  %s2739_s8 = inlined_call_operand.vmem [shape: f32[1,128], index: 8, kind: input, shape index: {}]   ;;  %s2740_s9 = inlined_call_operand.vmem [shape: bf16[32,128], index: 9, kind: input, shape index: {}]   ;;  %s2741_s10 = inlined_call_operand.vmem [shape: f32[1,128], index: 10, kind: input, shape index: {}]   ;;  %s2742_s11 = inlined_call_operand.hbm [shape: f32[16,32], index: 11, kind: output, shape index: {0}]   ;;  %s2743_s12 = inlined_call_operand.hbm [shape: f32[16,32], index: 12, kind: output, shape index: {1}]   ;;  %s2744_s13 = inlined_call_operand.hbm [shape: f32[16,128], index: 13, kind: output, shape index: {2}]  }
   0x1   :  { %20 = vsyncpa [#allocation7], 0 }
   0x2   :  { %21 = vsyncpa [#allocation10], 0 }
   0x3   :  { %22 = vsyncpa [#allocation13], 0 }
   0x4   :  { %23 = vsyncpa [#allocation5], 0 }
   0x5   :  { %24 = vsyncpa [#allocation16], 0  ;;  %s2057_s25 = smov [#allocation6]   ;;  %s1847_s29 = scalar_lea.hbm %s2732_s1, 256 }
   0x6   :  { %s42_s26 = sshll.u32 %s2057_s25, 4  ;;  %p1848_p0 = scmp.ne.s32.totalorder %s2732_s1, %s1847_s29  ;;  %s43_s26 = int_to_ptr.vmem [resolvable:$true] %s42_s26 }
   0x7   :  { %p1851_p1 = scmp.lt.u32.totalorder %s1847_s29, %s2732_s1 }
   0x9   :  { %p1853_p2 = pnand %p1851_p1, %p1848_p0 }
   0xb   :  { %1856 = shalt.err (!%p1853_p2)
}
   0xc   :  { %s1857_s17 = scalar_lea.vmem %s43_s26, 256  ;;  %p1862_p4 = scmp.lt.s32.totalorder %s43_s26, %s43_s26 }
   0xd   :  { %p1858_p3 = scmp.ne.s32.totalorder %s43_s26, %s1857_s17  ;;  %p1863_p5 = scmp.lt.s32.totalorder %s1857_s17, %s1857_s17 }
   0xf   :  { %p1864_p6 = por %p1863_p5, %p1862_p4 }
  0x11   :  { %p1865_p7 = pnand %p1864_p6, %p1858_p3 }
  0x13   :  { %1868 = shalt.err (!%p1865_p7)
}
  0x14   :  { %s2058_s18 = smov 128   ;;  %s2059_s19 = smov 8  }
  0x15   :  { %48 = dma.hbm_to_vmem [thread:$0]  %s2732_s1, 256, %s43_s26, [#allocation7], %s2058_s18, %s2058_s18, %s2059_s19  }
  0x16   :  { %s2060_s22 = smov [#allocation9]   ;;  %s2061_s24 = smov [#allocation3]  }
  0x17   :  { %s66_s23 = sshll.u32 %s2060_s22, 4  ;;  %s30_s25 = sshll.u32 %s2061_s24, 4  ;;  %s67_s23 = int_to_ptr.vmem [resolvable:$true] %s66_s23  ;;  %s31_s25 = int_to_ptr.vmem [resolvable:$true] %s30_s25 }
  0x18   :  { %s1869_s29 = scalar_lea.hbm %s2734_s3, 1024 }
  0x19   :  { %p1870_p8 = scmp.ne.s32.totalorder %s2734_s3, %s1869_s29  ;;  %p1873_p9 = scmp.lt.u32.totalorder %s1869_s29, %s2734_s3 }
  0x1b   :  { %p1875_p10 = pnand %p1873_p9, %p1870_p8 }
  0x1d   :  { %1878 = shalt.err (!%p1875_p10)
}
  0x1e   :  { %s1879_s1 = scalar_lea.vmem %s67_s23, 1024  ;;  %p1884_p12 = scmp.lt.s32.totalorder %s67_s23, %s67_s23 }
  0x1f   :  { %p1880_p11 = scmp.ne.s32.totalorder %s67_s23, %s1879_s1  ;;  %p1885_p13 = scmp.lt.s32.totalorder %s1879_s1, %s1879_s1 }
  0x21   :  { %p1886_p0 = por %p1885_p13, %p1884_p12 }
  0x23   :  { %p1887_p1 = pnand %p1886_p0, %p1880_p11 }
  0x25   :  { %1890 = shalt.err (!%p1887_p1)
}
  0x26   :  { %s2062_s26 = smov 64   ;;  %s2063_s17 = smov 4  }
  0x27   :  { %72 = dma.hbm_to_vmem [thread:$0]  %s2734_s3, 1024, %s67_s23, [#allocation10], %s2062_s26, %s2062_s26, %s2063_s17  }
  0x28   :  { %s1891_s27 = scalar_lea.hbm %s2731_s0, 128 }
  0x29   :  { %p1892_p2 = scmp.ne.s32.totalorder %s2731_s0, %s1891_s27  ;;  %p1895_p3 = scmp.lt.u32.totalorder %s1891_s27, %s2731_s0 }
  0x2b   :  { %p1897_p4 = pnand %p1895_p3, %p1892_p2 }
  0x2d   :  { %1900 = shalt.err (!%p1897_p4)
}
  0x2e   :  { %s1901_s15 = scalar_lea.vmem %s31_s25, 128  ;;  %p1906_p6 = scmp.lt.s32.totalorder %s31_s25, %s31_s25 }
  0x2f   :  { %p1902_p5 = scmp.ne.s32.totalorder %s31_s25, %s1901_s15  ;;  %p1907_p7 = scmp.lt.s32.totalorder %s1901_s15, %s1901_s15 }
  0x31   :  { %p1908_p8 = por %p1907_p7, %p1906_p6 }
  0x33   :  { %p1909_p9 = pnand %p1908_p8, %p1902_p5 }
  0x35   :  { %1912 = shalt.err (!%p1909_p9)
}
  0x36   :  { %36 = dma.hbm_to_vmem [thread:$0]  %s2731_s0, 128, %s31_s25, [#allocation4], %s2062_s26, %s2062_s26, %s2063_s17  }
  0x37   :  { %s2064_s16 = smov [#allocation8]   ;;  %s2065_s20 = smov [#allocation11]  }
  0x38   :  { %s54_s1 = sshll.u32 %s2064_s16, 4  ;;  %s78_s21 = sshll.u32 %s2065_s20, 4  ;;  %s55_s1 = int_to_ptr.vmem [resolvable:$true] %s54_s1  ;;  %s79_s21 = int_to_ptr.vmem [resolvable:$true] %s78_s21 }
  0x39   :  { %s1913_s27 = scalar_lea.hbm %s2733_s2, 256 }
  0x3a   :  { %p1914_p10 = scmp.ne.s32.totalorder %s2733_s2, %s1913_s27  ;;  %p1917_p11 = scmp.lt.u32.totalorder %s1913_s27, %s2733_s2 }
  0x3c   :  { %p1919_p12 = pnand %p1917_p11, %p1914_p10 }
  0x3e   :  { %1922 = shalt.err (!%p1919_p12)
}
  0x3f   :  { %s1923_s0 = scalar_lea.vmem %s55_s1, 256  ;;  %p1928_p0 = scmp.lt.s32.totalorder %s55_s1, %s55_s1 }
  0x40   :  { %p1924_p13 = scmp.ne.s32.totalorder %s55_s1, %s1923_s0  ;;  %p1929_p1 = scmp.lt.s32.totalorder %s1923_s0, %s1923_s0 }
  0x42   :  { %p1930_p2 = por %p1929_p1, %p1928_p0 }
  0x44   :  { %p1931_p3 = pnand %p1930_p2, %p1924_p13 }
  0x46   :  { %1934 = shalt.err (!%p1931_p3)
}
  0x47   :  { %60 = dma.hbm_to_vmem [thread:$0]  %s2733_s2, 256, %s55_s1, [#allocation7], %s2058_s18, %s2058_s18, %s2059_s19  }
  0x48   :  { %s1935_s16 = scalar_lea.hbm %s2735_s4, 2048 }
  0x49   :  { %p1936_p4 = scmp.ne.s32.totalorder %s2735_s4, %s1935_s16  ;;  %p1939_p5 = scmp.lt.u32.totalorder %s1935_s16, %s2735_s4 }
  0x4b   :  { %p1941_p6 = pnand %p1939_p5, %p1936_p4 }
  0x4d   :  { %1944 = shalt.err (!%p1941_p6)
}
  0x4e   :  { %s1945_s28 = scalar_lea.vmem %s79_s21, 2048  ;;  %p1950_p8 = scmp.lt.s32.totalorder %s79_s21, %s79_s21 }
  0x4f   :  { %p1946_p7 = scmp.ne.s32.totalorder %s79_s21, %s1945_s28  ;;  %p1951_p9 = scmp.lt.s32.totalorder %s1945_s28, %s1945_s28 }
  0x51   :  { %p1952_p10 = por %p1951_p9, %p1950_p8 }
  0x53   :  { %p1953_p11 = pnand %p1952_p10, %p1946_p7 }
  0x55   :  { %1956 = shalt.err (!%p1953_p11)
}
  0x56   :  { %84 = dma.hbm_to_vmem [thread:$0]  %s2735_s4, 2048, %s79_s21, [#allocation10], %s2058_s18, %s2058_s18, %s2059_s19  }
  0x57   :  { %s2066_s29 = smov [#allocation12]   ;;  %s1957_s25 = scalar_lea.hbm %s2738_s7, 896 }
  0x58   :  { %s94_s30 = sshll.u32 %s2066_s29, 4  ;;  %p1958_p12 = scmp.ne.s32.totalorder %s2738_s7, %s1957_s25  ;;  %s95_s30 = int_to_ptr.vmem [resolvable:$true] %s94_s30 }
  0x59   :  { %p1961_p13 = scmp.lt.u32.totalorder %s1957_s25, %s2738_s7 }
  0x5b   :  { %p1963_p0 = pnand %p1961_p13, %p1958_p12 }
  0x5d   :  { %1966 = shalt.err (!%p1963_p0)
}
  0x5e   :  { %s1967_s20 = scalar_lea.vmem %s95_s30, 896  ;;  %p1972_p2 = scmp.lt.s32.totalorder %s95_s30, %s95_s30 }
  0x5f   :  { %p1968_p1 = scmp.ne.s32.totalorder %s95_s30, %s1967_s20  ;;  %p1973_p3 = scmp.lt.s32.totalorder %s1967_s20, %s1967_s20 }
  0x61   :  { %p1974_p4 = por %p1973_p3, %p1972_p2 }
  0x63   :  { %p1975_p5 = pnand %p1974_p4, %p1968_p1 }
  0x65   :  { %1978 = shalt.err (!%p1975_p5)
}
  0x66   :  { %100 = dma.hbm_to_vmem [thread:$0]  %s2738_s7, 896, %s95_s30, [#allocation13], %s2062_s26, %s2062_s26, %s2063_s17  }
  0x67   :  { %2045 = dma.done.wait [#allocation4], 128  }
  0x68   :  { %2046 = vsyncadd [#allocation4], 4294967168 }
  0x69   :  { %2047 = dma.done.wait [#allocation7], 512  }
  0x6a   :  { %2048 = vsyncadd [#allocation7], 4294966784 }
  0x6b   :  { %2049 = dma.done.wait [#allocation10], 3072  }
  0x6c   :  { %2050 = vsyncadd [#allocation10], 4294964224 }
  0x6d   :  { %2051 = dma.done.wait [#allocation13], 896  }
  0x6e   :  { %2052 = vsyncadd [#allocation13], 4294966400  ;;  %v2067_v0 = vmov 0.0   ;;  %vm2068_vm0 = vmmov 0   ;;  %v1751_v1 = vld [vmem:[%s2736_s5] sm:$0xff]   ;;  %v1752_v2 = vld [vmem:[%s2736_s5 + $0x8] sm:$0xff]   ;;  %v236_v8 = vlaneseq }
  0x6f   :  { %1694 = vmatprep.subr.bf16.mxu0 %v2067_v0  ;;  %1698 = vmatprep.mubr.msk.bf16.mxu0 %vm2068_vm0, %v2067_v0  ;;  %v130_v3 = vld [vmem:[#allocation6] sm:$0xff]  ;;  %v131_v4 = vld [vmem:[#allocation6 + $0x8] sm:$0xff]  ;;  %vm185_vm1 = vcmask 261120   ;;  %v2069_v6 = vmov 1966171168   ;;  %v154_v29 = vld [vmem:[#allocation11 + $0x10] sm:$0xff] }
  0x70   :  { %1702 = vmatprep.subr.bf16.mxu1 %v2067_v0  ;;  %1716 = vmatprep.mubr.msk.bf16.mxu1 %vm2068_vm0, %v2067_v0  ;;  %v2249_v5 = vpack.c.bf16 %v131_v4, %v130_v3  ;;  %v234_v7 = vunpack.c.l.s4 %v2069_v6  ;;  %v2256_v10 = vshrl.u32 %v236_v8, 7  ;;  %v152_v23 = vld [vmem:[#allocation11] sm:$0xff]  ;;  %v153_v28 = vld [vmem:[#allocation11 + $0x8] sm:$0xff]  ;;  %v155_v51 = vld [vmem:[#allocation11 + $0x18] sm:$0xff]  ;;  %vm595_vm2 = vcmask 1041409   ;;  %s2072_s28 = smov 16  }
  0x71   :  { %1695 = vmatpush3.bf16.msra.mxu0 %v1751_v1  ;;  %v156_v41 = vld [vmem:[#allocation11 + $0x20] sm:$0xff]  ;;  %v161_v50 = vld [vmem:[#allocation11 + $0x48] sm:$0xff]  ;;  %v162_v55 = vld [vmem:[#allocation11 + $0x50] sm:$0xff]  ;;  %vm597_vm3 = vcmask 1042434   ;;  %vm599_vm4 = vcmask 1043459   ;;  %vm601_vm5 = vcmask 1044484  }
  0x72   :  { %1696 = vmatprep.subr.bf16.mxu0 %v2067_v0  ;;  %v235_v9 = vunpack.c.0.s8 %v234_v7  ;;  %v2263_v16 = vsub.s32 0, %v2256_v10  ;;  %v160_v49 = vld [vmem:[#allocation11 + $0x40] sm:$0xff]  ;;  %v2287_v63 = vld [vmem:[%s2737_s6] ss:$0 sm:$0xff]  ;;  %v157_v1 = vld [vmem:[#allocation11 + $0x28] sm:$0xff]  ;;  %vm603_vm6 = vcmask 1045509  }
  0x73   :  { %v164_v6 = vld [vmem:[#allocation11 + $0x60] sm:$0xff]  ;;  %vm605_vm7 = vcmask 1046534   ;;  %vm607_vm8 = vcmask 1047559   ;;  %vm618_vm9 = vcmask 64512   ;;  %s2071_s6 = smov 80   ;;  %vm1117_vm10 = vcmask 523264  }
  0x74   :  { %v2259_v11 = vsub.s32 %v235_v9, %v2256_v10  ;;  %vm1303_vm11 = vcmask 130048   ;;  %vm1307_vm12 = vcmask 654336   ;;  %vm1373_vm13 = vcmask 916480   ;;  %s2073_s29 = smov 32   ;;  %s2076_s15 = smov [#allocation14]  }
  0x75   :  { %1697 = vmatpush3.bf16.msra.mxu0 %v1752_v2  ;;  %s1575_s3 = sshll.u32 %s2076_s15, 4  ;;  %s2676_s3 = int_to_ptr.vmem [resolvable:$true] %s1575_s3 }
  0x76   :  { %1720 = vmatprep.subr.bf16.mxu0 %v2067_v0 }
  0x78   :  { %1699 = vmatmul.mubr.msk.bf16.vlgmr.msra.gmra.mrb[0].mxu0 %vm185_vm1, %v2249_v5 }
  0x79   :  { %1724 = vmatprep.mubr.msk.bf16.mxu0 %vm2068_vm0, %v2067_v0 }
 0x14b   :  { %v223_v12 = vpop.f32.mrb[0].mxu0 }
 0x14c   :  { %v232_v13 = vcombine.high %v223_v12, %v223_v12  ;;  %v239_v14 = vrot.slane %v223_v12, %v2259_v11  ;;  %v1700_v15 = vpop.f32.mrb[1].mxu0 }
 0x14d   :  { %v226_v17 = vpop.f32.mrb[2].mxu0 }
 0x14e   :  { %v246_v18 = vrot.slane %v232_v13, %v2259_v11  ;;  %v247_v19 = vcombine.high %v239_v14, %v239_v14  ;;  %v255_v20 = vrot.slane %v239_v14, %v2259_v11  ;;  %v1701_v21 = vpop.f32.mrb[3].mxu0  ;;  %v288_v22 = vrot.slane %v226_v17, %v2259_v11 }
 0x14f   :  { %v281_v31 = vcombine.high %v226_v17, %v226_v17 }
 0x150   :  { %v269_v24 = vrot.slane %v247_v19, %v2259_v11  ;;  %v277_v25 = vcombine.high %v255_v20, %v255_v20  ;;  %v262_v26 = vrot.slane %v246_v18, %v2259_v11  ;;  %v333_v27 = vrot.slane %v255_v20, %v2263_v16 }
 0x151   :  { %v296_v34 = vcombine.high %v288_v22, %v288_v22  ;;  %v248_v35 = vcombine.high %v246_v18, %v246_v18  ;;  %v304_v37 = vrot.slane %v288_v22, %v2259_v11  ;;  %v295_v42 = vrot.slane %v281_v31, %v2259_v11  ;;  %v158_v18 = vld [vmem:[#allocation11 + $0x30] sm:$0xff] }
 0x152   :  { %v337_v30 = vrot.slane %v269_v24, %v2263_v16  ;;  %v341_v32 = vrot.slane %v277_v25, %v2263_v16  ;;  %v410_v33 = vadd.f32 %v333_v27, %v152_v23  ;;  %v279_v36 = vcombine.high %v269_v24, %v269_v24  ;;  %v163_v23 = vld [vmem:[#allocation11 + $0x58] sm:$0xff] }
 0x153   :  { %v349_v38 = vrot.slane %v262_v26, %v2263_v16  ;;  %v318_v43 = vrot.slane %v296_v34, %v2259_v11  ;;  %v326_v44 = vcombine.high %v304_v37, %v304_v37  ;;  %v365_v45 = vrot.slane %v304_v37, %v2263_v16  ;;  %v159_v25 = vld [vmem:[#allocation11 + $0x38] sm:$0xff] }
 0x154   :  { %v411_v39 = vadd.f32 %v337_v30, %v153_v28  ;;  %v412_v40 = vadd.f32 %v341_v32, %v154_v29  ;;  %1763 = vtanh.f32 %v410_v33  ;;  %v276_v46 = vrot.slane %v248_v35, %v2259_v11  ;;  %v165_v32 = vld [vmem:[#allocation11 + $0x68] sm:$0xff] }
 0x155   :  { %v345_v47 = vrot.slane %v279_v36, %v2263_v16  ;;  %v414_v48 = vadd.f32 %v349_v38, %v156_v41  ;;  %v311_v52 = vrot.slane %v295_v42, %v2259_v11  ;;  %v369_v53 = vrot.slane %v318_v43, %v2263_v16 }
 0x156   :  { %1765 = vtanh.f32 %v411_v39  ;;  %v373_v54 = vrot.slane %v326_v44, %v2263_v16  ;;  %v278_v56 = vcombine.high %v262_v26, %v262_v26  ;;  %v297_v57 = vcombine.high %v295_v42, %v295_v42 }
 0x157   :  { %1767 = vtanh.f32 %v412_v40  ;;  %v418_v58 = vadd.f32 %v365_v45, %v160_v49  ;;  %v419_v59 = vadd.f32 %v369_v53, %v161_v50  ;;  %v353_v60 = vrot.slane %v276_v46, %v2263_v16 }
 0x158   :  { %v413_v61 = vadd.f32 %v345_v47, %v155_v51  ;;  %1769 = vtanh.f32 %v414_v48  ;;  %v328_v62 = vcombine.high %v318_v43, %v318_v43  ;;  %v381_v2 = vrot.slane %v311_v52, %v2263_v16  ;;  %v166_v43 = vld [vmem:[#allocation11 + $0x70] sm:$0xff] }
 0x159   :  { %v420_v3 = vadd.f32 %v373_v54, %v162_v55  ;;  %1771 = vtanh.f32 %v418_v58  ;;  %v280_v7 = vcombine.high %v276_v46, %v276_v46  ;;  %v357_v9 = vrot.slane %v278_v56, %v2263_v16 }
 0x15a   :  { %1773 = vtanh.f32 %v419_v59  ;;  %v415_v14 = vadd.f32 %v353_v60, %v157_v1  ;;  %v325_v15 = vrot.slane %v297_v57, %v2259_v11  ;;  %v377_v17 = vrot.slane %v328_v62, %v2263_v16 }
 0x15b   :  { %1775 = vtanh.f32 %v413_v61  ;;  %v422_v19 = vadd.f32 %v381_v2, %v164_v6  ;;  %v361_v24 = vrot.slane %v280_v7, %v2263_v16  ;;  %v416_v26 = vadd.f32 %v357_v9, %v158_v18 }
 0x15c   :  { %1777 = vtanh.f32 %v420_v3  ;;  %v327_v27 = vcombine.high %v311_v52, %v311_v52  ;;  %v385_v11 = vrot.slane %v325_v15, %v2263_v16  ;;  %v421_v28 = vadd.f32 %v377_v17, %v163_v23  ;;  %v167_v52 = vld [vmem:[#allocation11 + $0x78] sm:$0xff] }
 0x15d   :  { %1779 = vtanh.f32 %v415_v14  ;;  %v417_v34 = vadd.f32 %v361_v24, %v159_v25  ;;  %v329_v36 = vcombine.high %v325_v15, %v325_v15 }
 0x15e   :  { %v1764_v4 = vpop.eup %1763  ;;  %1781 = vtanh.f32 %v422_v19  ;;  %v389_v37 = vrot.slane %v327_v27, %v2263_v16  ;;  %v423_v39 = vadd.f32 %v385_v11, %v165_v32 }
 0x15f   :  { %v449_v12 = vmul.f32 %v1764_v4, %v2287_v63  ;;  %1783 = vtanh.f32 %v416_v26  ;;  %v393_v47 = vrot.slane %v329_v36, %v2263_v16 }
 0x160   :  { %v1766_v13 = vpop.eup %1765  ;;  %1785 = vtanh.f32 %v421_v28  ;;  %v424_v48 = vadd.f32 %v389_v37, %v166_v43  ;;  %v530_v28 = vand.u32 127, %v236_v8 }
 0x161   :  { %v465_v20 = vsel %vm185_vm1, %v449_v12, 0.0  ;;  %v450_v21 = vmul.f32 %v1766_v13, %v2287_v63  ;;  %v1768_v22 = vpop.eup %1767  ;;  %1787 = vtanh.f32 %v417_v34  ;;  %v425_v56 = vadd.f32 %v393_v47, %v167_v52 }
 0x162   :  { %466 = vadd.xlane.f32.xlu0 %v465_v20  ;;  %v451_v30 = vmul.f32 %v1768_v22, %v2287_v63  ;;  %v1770_v31 = vpop.eup %1769  ;;  %1789 = vtanh.f32 %v423_v39 }
 0x163   :  { %v468_v29 = vsel %vm185_vm1, %v450_v21, 0.0  ;;  %v1772_v33 = vpop.eup %1771  ;;  %v453_v41 = vmul.f32 %v1770_v31, %v2287_v63  ;;  %1791 = vtanh.f32 %v424_v48 }
 0x164   :  { %v1774_v35 = vpop.eup %1773  ;;  %v457_v38 = vmul.f32 %v1772_v33, %v2287_v63  ;;  %v471_v40 = vsel %vm185_vm1, %v451_v30, 0.0  ;;  %1793 = vtanh.f32 %v425_v56 }
 0x165   :  { %v1776_v42 = vpop.eup %1775  ;;  %v458_v45 = vmul.f32 %v1774_v35, %v2287_v63  ;;  %v477_v49 = vsel %vm185_vm1, %v453_v41, 0.0 }
 0x166   :  { %469 = vadd.xlane.f32.xlu0 %v468_v29  ;;  %v489_v44 = vsel %vm185_vm1, %v457_v38, 0.0  ;;  %v1778_v46 = vpop.eup %1777  ;;  %v452_v50 = vmul.f32 %v1776_v42, %v2287_v63 }
 0x167   :  { %490 = vadd.xlane.f32.xlu1 %v489_v44  ;;  %v1780_v51 = vpop.eup %1779  ;;  %v492_v53 = vsel %vm185_vm1, %v458_v45, 0.0  ;;  %v459_v54 = vmul.f32 %v1778_v46, %v2287_v63 }
 0x168   :  { %v1782_v55 = vpop.eup %1781  ;;  %v474_v57 = vsel %vm185_vm1, %v452_v50, 0.0  ;;  %v454_v58 = vmul.f32 %v1780_v51, %v2287_v63 }
 0x169   :  { %v1784_v59 = vpop.eup %1783  ;;  %v495_v60 = vsel %vm185_vm1, %v459_v54, 0.0  ;;  %v461_v61 = vmul.f32 %v1782_v55, %v2287_v63 }
 0x16a   :  { %472 = vadd.xlane.f32.xlu0 %v471_v40  ;;  %v1786_v62 = vpop.eup %1785  ;;  %v480_v1 = vsel %vm185_vm1, %v454_v58, 0.0  ;;  %v455_v2 = vmul.f32 %v1784_v59, %v2287_v63 }
 0x16b   :  { %493 = vadd.xlane.f32.xlu1 %v492_v53  ;;  %v1788_v3 = vpop.eup %1787  ;;  %v501_v4 = vsel %vm185_vm1, %v461_v61, 0.0  ;;  %v460_v6 = vmul.f32 %v1786_v62, %v2287_v63 }
 0x16c   :  { %v1790_v7 = vpop.eup %1789  ;;  %v483_v9 = vsel %vm185_vm1, %v455_v2, 0.0  ;;  %v456_v12 = vmul.f32 %v1788_v3, %v2287_v63 }
 0x16d   :  { %v498_v13 = vsel %vm185_vm1, %v460_v6, 0.0  ;;  %v462_v14 = vmul.f32 %v1790_v7, %v2287_v63  ;;  %v1792_v15 = vpop.eup %1791 }
 0x16e   :  { %478 = vadd.xlane.f32.xlu0 %v477_v49  ;;  %v486_v17 = vsel %vm185_vm1, %v456_v12, 0.0  ;;  %v463_v19 = vmul.f32 %v1792_v15, %v2287_v63  ;;  %v1794_v20 = vpop.eup %1793  ;;  %v2417_v15 = vsub.s32 2, %v2256_v10 }
 0x16f   :  { %496 = vadd.xlane.f32.xlu1 %v495_v60  ;;  %v504_v18 = vsel %vm185_vm1, %v462_v14, 0.0  ;;  %v464_v22 = vmul.f32 %v1794_v20, %v2287_v63  ;;  %v2345_v63 = vsub.s32 %v530_v28, %v2256_v10  ;;  %v2414_v14 = vsub.s32 1, %v2256_v10 }
 0x170   :  { %v507_v21 = vsel %vm185_vm1, %v463_v19, 0.0  ;;  %v2433_v28 = vsub.s32 4, %v2256_v10 }
 0x171   :  { %v510_v23 = vsel %vm185_vm1, %v464_v22, 0.0 }
 0x172   :  { %475 = vadd.xlane.f32.xlu0 %v474_v57 }
 0x173   :  { %502 = vadd.xlane.f32.xlu1 %v501_v4 }
 0x176   :  { %481 = vadd.xlane.f32.xlu0 %v480_v1 }
 0x177   :  { %499 = vadd.xlane.f32.xlu1 %v498_v13  ;;  %v2070_v13 = vmov 0  }
 0x178   :  { %1750 = vset.pattern.permute.xlu1 %v2070_v13  ;;  %1749 = vset.pattern.permute.xlu0 %v2070_v13 }
 0x17a   :  { %484 = vadd.xlane.f32.xlu0 %v483_v9 }
 0x17b   :  { %505 = vadd.xlane.f32.xlu1 %v504_v18 }
 0x17e   :  { %487 = vadd.xlane.f32.xlu0 %v486_v17  ;;  %v2420_v17 = vsub.s32 3, %v2256_v10 }
 0x17f   :  { %508 = vadd.xlane.f32.xlu1 %v507_v21 }
 0x183   :  { %511 = vadd.xlane.f32.xlu1 %v510_v23 }
 0x1ef   :  { %v2329_v24 = vpop.xlane.xlu0 %466 }
 0x1f0   :  { %v534_v8 = vrot.slane %v2329_v24, %v2345_v63 }
 0x1f3   :  { %v2331_v25 = vpop.xlane.xlu0 %469 }
 0x1f4   :  { %v2335_v27 = vpop.xlane.xlu1 %490  ;;  %v538_v32 = vrot.slane %v2331_v25, %v2345_v63 }
 0x1f5   :  { %v566_v52 = vrot.slane %v2335_v27, %v2345_v63 }
 0x1f6   :  { %v596_v37 = vsel %vm595_vm2, %v538_v32, %v534_v8 }
 0x1f7   :  { %v2333_v26 = vpop.xlane.xlu0 %472 }
 0x1f8   :  { %v2340_v29 = vpop.xlane.xlu1 %493  ;;  %v542_v33 = vrot.slane %v2333_v26, %v2345_v63 }
 0x1f9   :  { %v570_v45 = vrot.slane %v2340_v29, %v2345_v63 }
 0x1fa   :  { %v598_v38 = vsel %vm597_vm3, %v542_v33, %v596_v37  ;;  %v2439_v37 = vsub.s32 5, %v2256_v10 }
 0x1fb   :  { %v2337_v11 = vpop.xlane.xlu0 %478  ;;  %v609_v56 = vsel %vm595_vm2, %v570_v45, %v566_v52 }
 0x1fc   :  { %v2347_v31 = vpop.xlane.xlu1 %496  ;;  %v550_v43 = vrot.slane %v2337_v11, %v2345_v63 }
 0x1fd   :  { %v574_v48 = vrot.slane %v2347_v31, %v2345_v63 }
 0x1ff   :  { %v2342_v30 = vpop.xlane.xlu0 %475  ;;  %v610_v58 = vsel %vm597_vm3, %v574_v48, %v609_v56 }
 0x200   :  { %v2357_v35 = vpop.xlane.xlu1 %502  ;;  %v546_v36 = vrot.slane %v2342_v30, %v2345_v63 }
 0x201   :  { %v582_v62 = vrot.slane %v2357_v35, %v2345_v63 }
 0x202   :  { %v600_v40 = vsel %vm599_vm4, %v546_v36, %v598_v38 }
 0x203   :  { %v2353_v34 = vpop.xlane.xlu0 %481  ;;  %v602_v47 = vsel %vm601_vm5, %v550_v43, %v600_v40 }
 0x204   :  { %v2366_v41 = vpop.xlane.xlu1 %499  ;;  %v554_v42 = vrot.slane %v2353_v34, %v2345_v63 }
 0x205   :  { %v578_v53 = vrot.slane %v2366_v41, %v2345_v63 }
 0x206   :  { %v604_v51 = vsel %vm603_vm6, %v554_v42, %v602_v47  ;;  %v2445_v42 = vsub.s32 6, %v2256_v10 }
 0x207   :  { %v2363_v39 = vpop.xlane.xlu0 %484  ;;  %v611_v60 = vsel %vm599_vm4, %v578_v53, %v610_v58 }
 0x208   :  { %v558_v44 = vrot.slane %v2363_v39, %v2345_v63  ;;  %v2381_v49 = vpop.xlane.xlu1 %505  ;;  %v612_v3 = vsel %vm601_vm5, %v582_v62, %v611_v60 }
 0x209   :  { %v586_v61 = vrot.slane %v2381_v49, %v2345_v63 }
 0x20a   :  { %v606_v54 = vsel %vm605_vm7, %v558_v44, %v604_v51 }
 0x20b   :  { %v2376_v46 = vpop.xlane.xlu0 %487  ;;  %v613_v6 = vsel %vm603_vm6, %v586_v61, %v612_v3 }
 0x20c   :  { %v562_v50 = vrot.slane %v2376_v46, %v2345_v63  ;;  %v2395_v59 = vpop.xlane.xlu1 %508 }
 0x20d   :  { %v590_v1 = vrot.slane %v2395_v59, %v2345_v63 }
 0x20e   :  { %v608_v55 = vsel %vm607_vm8, %v562_v50, %v606_v54 }
 0x20f   :  { %v619_v57 = vsel %vm618_vm9, %v608_v55, -inf  ;;  %v614_v7 = vsel %vm605_vm7, %v590_v1, %v613_v6 }
 0x210   :  { %620 = vmax.xlane.f32.xlu0 %v619_v57  ;;  %v2404_v2 = vpop.xlane.xlu1 %511 }
 0x211   :  { %v594_v4 = vrot.slane %v2404_v2, %v2345_v63 }
 0x213   :  { %v615_v9 = vsel %vm607_vm8, %v594_v4, %v614_v7 }
 0x214   :  { %v622_v12 = vsel %vm618_vm9, %v615_v9, -inf }
 0x215   :  { %623 = vmax.xlane.f32.xlu1 %v622_v12 }
 0x29d   :  { %v2422_v18 = vpop.xlane.xlu0 %620 }
 0x29e   :  { %v630_v19 = vrot.slane %v2422_v18, %v2263_v16  ;;  %v634_v20 = vrot.slane %v2422_v18, %v2414_v14  ;;  %v638_v21 = vrot.slane %v2422_v18, %v2417_v15  ;;  %v642_v32 = vrot.slane %v2422_v18, %v2420_v17 }
 0x29f   :  { %v646_v38 = vrot.slane %v2422_v18, %v2433_v28 }
 0x2a0   :  { %v707_v22 = vsub.f32 %v2329_v24, %v630_v19  ;;  %v708_v23 = vsub.f32 %v2331_v25, %v634_v20  ;;  %v709_v33 = vsub.f32 %v2333_v26, %v638_v21  ;;  %v710_v24 = vsub.f32 %v2342_v30, %v642_v32 }
 0x2a1   :  { %v650_v26 = vrot.slane %v2422_v18, %v2439_v37  ;;  %v711_v44 = vsub.f32 %v2337_v11, %v646_v38  ;;  %v654_v30 = vrot.slane %v2422_v18, %v2445_v42 }
 0x2a2   :  { %v723_v8 = vmul.f32 1.442695, %v707_v22  ;;  %v725_v36 = vmul.f32 1.442695, %v708_v23  ;;  %v727_v25 = vmul.f32 1.442695, %v709_v33  ;;  %v624_v40 = vpop.xlane.xlu1 %623 }
 0x2a3   :  { %v678_v43 = vrot.slane %v624_v40, %v2433_v28  ;;  %v729_v45 = vmul.f32 1.442695, %v710_v24  ;;  %v682_v47 = vrot.slane %v624_v40, %v2439_v37  ;;  %v712_v50 = vsub.f32 %v2353_v34, %v650_v26 }
 0x2a4   :  { %1795 = vpow2.f32 %v723_v8  ;;  %v731_v51 = vmul.f32 1.442695, %v711_v44  ;;  %v686_v53 = vrot.slane %v624_v40, %v2445_v42  ;;  %v713_v34 = vsub.f32 %v2363_v39, %v654_v30 }
 0x2a5   :  { %1797 = vpow2.f32 %v725_v36  ;;  %v719_v48 = vsub.f32 %v2357_v35, %v678_v43  ;;  %v720_v54 = vsub.f32 %v2381_v49, %v682_v47  ;;  %v2464_v35 = vsub.s32 7, %v2256_v10 }
 0x2a6   :  { %1799 = vpow2.f32 %v727_v25  ;;  %v733_v56 = vmul.f32 1.442695, %v712_v50  ;;  %v662_v57 = vrot.slane %v624_v40, %v2263_v16  ;;  %v721_v49 = vsub.f32 %v2395_v59, %v686_v53 }
 0x2a7   :  { %1801 = vpow2.f32 %v729_v45  ;;  %v747_v11 = vmul.f32 1.442695, %v719_v48  ;;  %v690_v58 = vrot.slane %v624_v40, %v2464_v35  ;;  %v749_v60 = vmul.f32 1.442695, %v720_v54 }
 0x2a8   :  { %1803 = vpow2.f32 %v731_v51  ;;  %v735_v10 = vmul.f32 1.442695, %v713_v34  ;;  %v666_v62 = vrot.slane %v624_v40, %v2414_v14  ;;  %v715_v39 = vsub.f32 %v2335_v27, %v662_v57 }
 0x2a9   :  { %1805 = vpow2.f32 %v747_v11  ;;  %v722_v1 = vsub.f32 %v2404_v2, %v690_v58  ;;  %v751_v3 = vmul.f32 1.442695, %v721_v49  ;;  %v670_v59 = vrot.slane %v624_v40, %v2417_v15 }
 0x2aa   :  { %1807 = vpow2.f32 %v733_v56  ;;  %v716_v6 = vsub.f32 %v2340_v29, %v666_v62  ;;  %v739_v7 = vmul.f32 1.442695, %v715_v39  ;;  %v674_v27 = vrot.slane %v624_v40, %v2420_v17 }
 0x2ab   :  { %1809 = vpow2.f32 %v749_v60  ;;  %v753_v9 = vmul.f32 1.442695, %v722_v1  ;;  %v717_v2 = vsub.f32 %v2347_v31, %v670_v59  ;;  %v658_v21 = vrot.slane %v2422_v18, %v2464_v35 }
 0x2ac   :  { %1811 = vpow2.f32 %v735_v10  ;;  %v741_v19 = vmul.f32 1.442695, %v716_v6  ;;  %v718_v22 = vsub.f32 %v2366_v41, %v674_v27 }
 0x2ad   :  { %1813 = vpow2.f32 %v751_v3  ;;  %v743_v23 = vmul.f32 1.442695, %v717_v2  ;;  %v714_v33 = vsub.f32 %v2376_v46, %v658_v21 }
 0x2ae   :  { %v2456_v52 = vpop.eup %1795  ;;  %1815 = vpow2.f32 %v739_v7  ;;  %v745_v8 = vmul.f32 1.442695, %v718_v22 }
 0x2af   :  { %v2460_v55 = vpop.eup %1797  ;;  %772 = vperm.xlu0 %1749, %v2456_v52   ;;  %1817 = vpow2.f32 %v753_v9  ;;  %v737_v41 = vmul.f32 1.442695, %v714_v33 }
 0x2b0   :  { %775 = vperm.xlu1 %1750, %v2460_v55   ;;  %v2471_v61 = vpop.eup %1799  ;;  %1819 = vpow2.f32 %v741_v19 }
 0x2b1   :  { %v2477_v4 = vpop.eup %1801  ;;  %1821 = vpow2.f32 %v743_v23 }
 0x2b2   :  { %v2482_v12 = vpop.eup %1803  ;;  %1823 = vpow2.f32 %v745_v8 }
 0x2b3   :  { %v2484_v13 = vpop.eup %1805  ;;  %1825 = vpow2.f32 %v737_v41 }
 0x2b4   :  { %778 = vperm.xlu1 %1750, %v2471_v61   ;;  %808 = vperm.xlu0 %1749, %v2484_v13   ;;  %v2490_v20 = vpop.eup %1807 }
 0x2b5   :  { %v2492_v29 = vpop.eup %1809 }
 0x2b6   :  { %v2499_v31 = vpop.eup %1811 }
 0x2b7   :  { %v2501_v32 = vpop.eup %1813 }
 0x2b8   :  { %781 = vperm.xlu1 %1750, %v2477_v4   ;;  %811 = vperm.xlu0 %1749, %v2492_v29   ;;  %v2506_v36 = vpop.eup %1815 }
 0x2b9   :  { %v2508_v18 = vpop.eup %1817 }
 0x2ba   :  { %v2512_v38 = vpop.eup %1819 }
 0x2bb   :  { %v2515_v46 = vpop.eup %1821 }
 0x2bc   :  { %784 = vperm.xlu1 %1750, %v2482_v12   ;;  %814 = vperm.xlu0 %1749, %v2501_v32   ;;  %v2518_v24 = vpop.eup %1823 }
 0x2bd   :  { %v2521_v25 = vpop.eup %1825 }
 0x2c0   :  { %787 = vperm.xlu1 %1750, %v2490_v20   ;;  %817 = vperm.xlu0 %1749, %v2508_v18  }
 0x2c4   :  { %790 = vperm.xlu1 %1750, %v2499_v31  }
 0x2c8   :  { %796 = vperm.xlu1 %1750, %v2506_v36  }
 0x2cc   :  { %799 = vperm.xlu1 %1750, %v2512_v38  }
 0x2d0   :  { %802 = vperm.xlu1 %1750, %v2515_v46  }
 0x2d4   :  { %805 = vperm.xlu1 %1750, %v2518_v24  }
 0x2d8   :  { %793 = vperm.xlu1 %1750, %v2521_v25  }
 0x32e   :  { %v773_v45 = vpop.permute.xlu0 %772 }
 0x32f   :  { %v776_v40 = vpop.permute.xlu1 %775  ;;  %v822_v34 = vrot.slane %v773_v45, %v2345_v63 }
 0x330   :  { %v826_v56 = vrot.slane %v776_v40, %v2345_v63 }
 0x332   :  { %v883_v1 = vsel %vm595_vm2, %v826_v56, %v822_v34 }
 0x333   :  { %v779_v43 = vpop.permute.xlu1 %778  ;;  %v809_v48 = vpop.permute.xlu0 %808 }
 0x334   :  { %v830_v58 = vrot.slane %v779_v43, %v2345_v63  ;;  %v870_v7 = vrot.slane %v809_v48, %v2345_v63 }
 0x336   :  { %v884_v9 = vsel %vm597_vm3, %v830_v58, %v883_v1 }
 0x337   :  { %v782_v26 = vpop.permute.xlu1 %781  ;;  %v812_v51 = vpop.permute.xlu0 %811 }
 0x338   :  { %v834_v60 = vrot.slane %v782_v26, %v2345_v63  ;;  %v874_v21 = vrot.slane %v812_v51, %v2345_v63 }
 0x33a   :  { %v885_v22 = vsel %vm599_vm4, %v834_v60, %v884_v9 }
 0x33b   :  { %v785_v44 = vpop.permute.xlu1 %784  ;;  %v815_v54 = vpop.permute.xlu0 %814 }
 0x33c   :  { %v838_v62 = vrot.slane %v785_v44, %v2345_v63  ;;  %v878_v33 = vrot.slane %v815_v54, %v2345_v63 }
 0x33e   :  { %v886_v8 = vsel %vm601_vm5, %v838_v62, %v885_v22  ;;  %v2595_v22 = vld [vmem:[#allocation9 + $0x20] sm:$0xff]  }
 0x33f   :  { %v788_v47 = vpop.permute.xlu1 %787  ;;  %v818_v27 = vpop.permute.xlu0 %817 }
 0x340   :  { %v842_v3 = vrot.slane %v788_v47, %v2345_v63  ;;  %v882_v43 = vrot.slane %v818_v27, %v2345_v63  ;;  %v1753_v27 = vld [vmem:[#allocation12] sm:$0xff]  }
 0x341   :  { %1703 = vmatpush3.bf16.msra.mxu1 %v1753_v27 }
 0x342   :  { %v887_v26 = vsel %vm603_vm6, %v842_v3, %v886_v8  ;;  %1704 = vmatprep.subr.bf16.mxu1 %v2067_v0 }
 0x343   :  { %v791_v30 = vpop.permute.xlu1 %790 }
 0x344   :  { %v846_v2 = vrot.slane %v791_v30, %v2345_v63 }
 0x346   :  { %v888_v48 = vsel %vm605_vm7, %v846_v2, %v887_v26  ;;  %v1677_v26 = vld [vmem:[#allocation9 + $0x28] sm:$0xff]  }
 0x347   :  { %v797_v50 = vpop.permute.xlu1 %796 }
 0x348   :  { %v854_v10 = vrot.slane %v797_v50, %v2345_v63 }
 0x34b   :  { %v800_v53 = vpop.permute.xlu1 %799 }
 0x34c   :  { %v858_v57 = vrot.slane %v800_v53, %v2345_v63 }
 0x34e   :  { %v890_v59 = vsel %vm595_vm2, %v858_v57, %v854_v10 }
 0x34f   :  { %v803_v11 = vpop.permute.xlu1 %802 }
 0x350   :  { %v862_v49 = vrot.slane %v803_v11, %v2345_v63 }
 0x352   :  { %v891_v19 = vsel %vm597_vm3, %v862_v49, %v890_v59 }
 0x353   :  { %v806_v39 = vpop.permute.xlu1 %805 }
 0x354   :  { %v866_v6 = vrot.slane %v806_v39, %v2345_v63 }
 0x356   :  { %v892_v23 = vsel %vm599_vm4, %v866_v6, %v891_v19 }
 0x357   :  { %v893_v41 = vsel %vm601_vm5, %v870_v7, %v892_v23  ;;  %v794_v40 = vpop.permute.xlu1 %793 }
 0x358   :  { %v850_v44 = vrot.slane %v794_v40, %v2345_v63  ;;  %v894_v45 = vsel %vm603_vm6, %v874_v21, %v893_v41  ;;  %v1673_v21 = vld [vmem:[#allocation9 + $0x8] sm:$0xff]  }
 0x359   :  { %v895_v47 = vsel %vm605_vm7, %v878_v33, %v894_v45  ;;  %v1647_v40 = vunpack.c.l.bf16 %v1673_v21 }
 0x35a   :  { %v896_v30 = vsel %vm607_vm8, %v882_v43, %v895_v47  ;;  %v889_v50 = vsel %vm607_vm8, %v850_v44, %v888_v48  ;;  %v1660_v43 = vunpack.c.h.bf16 %v2595_v22 }
 0x35b   :  { %v902_v51 = vsel %vm618_vm9, %v896_v30, 0.0  ;;  %v899_v53 = vsel %vm618_vm9, %v889_v50, 0.0 }
 0x35c   :  { %903 = vadd.xlane.f32.xlu0 %v902_v51  ;;  %900 = vadd.xlane.f32.xlu1 %v899_v53 }
 0x3e9   :  { %v904_v54 = vpop.xlane.xlu0 %903  ;;  %v901_v11 = vpop.xlane.xlu1 %900 }
 0x3ea   :  { %1827 = vrcp.f32 %v904_v54  ;;  %v1648_v54 = vunpack.c.h.bf16 %v1673_v21 }
 0x3eb   :  { %1829 = vrcp.f32 %v901_v11  ;;  %v1663_v11 = vunpack.c.l.bf16 %v1677_v26 }
 0x3f4   :  { %v1828_v63 = vpop.eup %1827 }
 0x3f5   :  { %v1830_v34 = vpop.eup %1829  ;;  %v948_v10 = vrot.slane %v1828_v63, %v2414_v14  ;;  %v952_v3 = vrot.slane %v1828_v63, %v2417_v15  ;;  %v944_v7 = vrot.slane %v1828_v63, %v2263_v16 }
 0x3f6   :  { %v916_v56 = vrot.slane %v1830_v34, %v2414_v14  ;;  %v912_v57 = vrot.slane %v1830_v34, %v2263_v16  ;;  %v920_v60 = vrot.slane %v1830_v34, %v2417_v15  ;;  %v924_v1 = vrot.slane %v1830_v34, %v2420_v17 }
 0x3f7   :  { %v998_v39 = vmul.f32 %v2512_v38, %v948_v10  ;;  %v928_v59 = vrot.slane %v1830_v34, %v2433_v28  ;;  %v956_v14 = vrot.slane %v1828_v63, %v2420_v17  ;;  %v932_v6 = vrot.slane %v1830_v34, %v2439_v37 }
 0x3f8   :  { %v990_v58 = vmul.f32 %v2460_v55, %v916_v56  ;;  %v989_v49 = vmul.f32 %v2456_v52, %v912_v57  ;;  %v991_v62 = vmul.f32 %v2471_v61, %v920_v60  ;;  %v992_v55 = vmul.f32 %v2477_v4, %v924_v1  ;;  %v1674_v56 = vld [vmem:[#allocation9 + $0x10] sm:$0xff]  }
 0x3f9   :  { %v999_v52 = vmul.f32 %v2515_v46, %v952_v3  ;;  %v993_v61 = vmul.f32 %v2482_v12, %v928_v59  ;;  %v1000_v38 = vmul.f32 %v2518_v24, %v956_v14  ;;  %v960_v15 = vrot.slane %v1828_v63, %v2433_v28 }
 0x3fa   :  { %1028 = vperm.xlu1 %1750, %v990_v58   ;;  %1023 = vperm.xlu0 %1749, %v989_v49   ;;  %v994_v4 = vmul.f32 %v2490_v20, %v932_v6  ;;  %v964_v17 = vrot.slane %v1828_v63, %v2439_v37  ;;  %v997_v12 = vmul.f32 %v2506_v36, %v944_v7  ;;  %v1664_v59 = vunpack.c.h.bf16 %v1677_v26 }
 0x3fb   :  { %v1001_v46 = vmul.f32 %v2484_v13, %v960_v15  ;;  %v936_v9 = vrot.slane %v1830_v34, %v2445_v42  ;;  %v968_v28 = vrot.slane %v1828_v63, %v2445_v42  ;;  %v940_v16 = vrot.slane %v1830_v34, %v2464_v35  ;;  %v1754_v42 = vld [vmem:[#allocation12 + $0x8] sm:$0xff]  }
 0x3fc   :  { %v1002_v24 = vmul.f32 %v2492_v29, %v964_v17  ;;  %v972_v37 = vrot.slane %v1828_v63, %v2464_v35  ;;  %1705 = vmatpush3.bf16.msra.mxu1 %v1754_v42  ;;  %v1756_v35 = vld [vmem:[#allocation12 + $0x18] sm:$0xff]  }
 0x3fd   :  { %v995_v20 = vmul.f32 %v2499_v31, %v936_v9  ;;  %v1003_v13 = vmul.f32 %v2501_v32, %v968_v28  ;;  %v996_v36 = vmul.f32 %v2521_v25, %v940_v16  ;;  %v1755_v31 = vld [vmem:[#allocation12 + $0x10] sm:$0xff]   ;;  %1706 = vmatprep.subr.bf16.mxu1 %v2067_v0  ;;  %v1757_v32 = vld [vmem:[#allocation12 + $0x20] sm:$0xff]  }
 0x3fe   :  { %1033 = vperm.xlu1 %1750, %v991_v62   ;;  %1068 = vperm.xlu0 %1749, %v998_v39   ;;  %v1004_v29 = vmul.f32 %v2508_v18, %v972_v37  ;;  %v1758_v18 = vld [vmem:[#allocation12 + $0x28] sm:$0xff]   ;;  %v1642_v25 = vld [vmem:[#allocation9] sm:$0xff]  }
 0x3ff   :  { %v1644_v2 = vunpack.c.h.bf16 %v1642_v25  ;;  %v1643_v19 = vunpack.c.l.bf16 %v1642_v25  ;;  %v1652_v25 = vunpack.c.h.bf16 %v1674_v56 }
 0x400   :  { %1707 = vmatpush3.bf16.msra.mxu1 %v1755_v31 }
 0x401   :  { %1708 = vmatprep.subr.bf16.mxu1 %v2067_v0 }
 0x402   :  { %1038 = vperm.xlu1 %1750, %v992_v55   ;;  %1073 = vperm.xlu0 %1749, %v999_v52   ;;  %v1651_v52 = vunpack.c.l.bf16 %v1674_v56 }
 0x404   :  { %1709 = vmatpush3.bf16.msra.mxu1 %v1756_v35  ;;  %v1678_v35 = vld [vmem:[#allocation9 + $0x30] sm:$0xff]  }
 0x405   :  { %1710 = vmatprep.subr.bf16.mxu1 %v2067_v0 }
 0x406   :  { %1043 = vperm.xlu1 %1750, %v993_v61   ;;  %1078 = vperm.xlu0 %1749, %v1000_v38  }
 0x408   :  { %1711 = vmatpush3.bf16.msra.mxu1 %v1757_v32 }
 0x409   :  { %1712 = vmatprep.subr.bf16.mxu1 %v2067_v0 }
 0x40a   :  { %1048 = vperm.xlu1 %1750, %v994_v4   ;;  %1083 = vperm.xlu0 %1749, %v1001_v46  }
 0x40c   :  { %1713 = vmatpush3.bf16.msra.mxu1 %v1758_v18 }
 0x40d   :  { %1714 = vmatprep.subr.bf16.mxu1 %v2067_v0 }
 0x40e   :  { %1063 = vperm.xlu1 %1750, %v997_v12   ;;  %1088 = vperm.xlu0 %1749, %v1002_v24  }
 0x412   :  { %1053 = vperm.xlu1 %1750, %v995_v20   ;;  %1093 = vperm.xlu0 %1749, %v1003_v13  }
 0x416   :  { %1058 = vperm.xlu1 %1750, %v996_v36   ;;  %1098 = vperm.xlu0 %1749, %v1004_v29  }
 0x41a   :  { %1301 = vrot.lane.b32.xlu0 %v2249_v5, %s2071_s6  ;;  %v1759_v5 = vld [vmem:[#allocation12 + $0x30] sm:$0xff]  }
 0x41b   :  { %1715 = vmatpush3.bf16.msra.mxu1 %v1759_v5 }
 0x479   :  { %v1029_v23 = vpop.permute.xlu1 %1028  ;;  %v1024_v33 = vpop.permute.xlu0 %1023 }
 0x47a   :  { %v1102_v8 = vmul.f32 %v1644_v2, %v1029_v23  ;;  %v1101_v41 = vmul.f32 %v1643_v19, %v1024_v33 }
 0x47c   :  { %v1125_v44 = vsel %vm1117_vm10, %v1102_v8, 0.0  ;;  %v1118_v45 = vsel %vm1117_vm10, %v1101_v41, 0.0  ;;  %v2606_v41 = vld [vmem:[#allocation9 + $0x18] sm:$0xff]  }
 0x47d   :  { %v1126_v47 = vrot.slane %v1125_v44, 4  ;;  %v1119_v48 = vrot.slane %v1118_v45, 4  ;;  %v1034_v30 = vpop.permute.xlu1 %1033  ;;  %v1069_v50 = vpop.permute.xlu0 %1068 }
 0x47e   :  { %v1103_v51 = vmul.f32 %v1647_v40, %v1034_v30  ;;  %v1110_v53 = vmul.f32 %v1660_v43, %v1069_v50  ;;  %v1667_v43 = vunpack.c.l.bf16 %v1678_v35  ;;  %v1659_v50 = vunpack.c.l.bf16 %v2595_v22 }
 0x47f   :  { %v1127_v63 = vadd.f32 %v1126_v47, %v1125_v44  ;;  %v1120_v34 = vadd.f32 %v1119_v48, %v1118_v45  ;;  %v2608_v48 = vld [vmem:[#allocation9 + $0x38] sm:$0xff]  }
 0x480   :  { %v1132_v57 = vsel %vm1117_vm10, %v1103_v51, 0.0  ;;  %v1181_v58 = vsel %vm1117_vm10, %v1110_v53, 0.0  ;;  %v1668_v53 = vunpack.c.h.bf16 %v1678_v35 }
 0x481   :  { %v1128_v49 = vrot.slane %v1127_v63, 2  ;;  %v1121_v60 = vrot.slane %v1120_v34, 2  ;;  %v1133_v10 = vrot.slane %v1132_v57, 4  ;;  %v1182_v62 = vrot.slane %v1181_v58, 4  ;;  %v1039_v39 = vpop.permute.xlu1 %1038  ;;  %v1074_v1 = vpop.permute.xlu0 %1073 }
 0x482   :  { %v1104_v3 = vmul.f32 %v1648_v54, %v1039_v39  ;;  %v1111_v55 = vmul.f32 %v1663_v11, %v1074_v1  ;;  %v1655_v11 = vunpack.c.l.bf16 %v2606_v41 }
 0x483   :  { %v1129_v14 = vadd.f32 %v1128_v49, %v1127_v63  ;;  %v1122_v61 = vadd.f32 %v1121_v60, %v1120_v34  ;;  %v1134_v38 = vadd.f32 %v1133_v10, %v1132_v57  ;;  %v1183_v6 = vadd.f32 %v1182_v62, %v1181_v58 }
 0x484   :  { %v1139_v15 = vsel %vm1117_vm10, %v1104_v3, 0.0  ;;  %v1188_v4 = vsel %vm1117_vm10, %v1111_v55, 0.0  ;;  %v1671_v60 = vunpack.c.l.bf16 %v2608_v48  ;;  %v1656_v10 = vunpack.c.h.bf16 %v2606_v41 }
 0x485   :  { %v1130_v46 = vrot.slane %v1129_v14, 1  ;;  %v1135_v7 = vrot.slane %v1134_v38, 2  ;;  %v1184_v17 = vrot.slane %v1183_v6, 2  ;;  %v1044_v12 = vpop.permute.xlu1 %1043  ;;  %v1079_v24 = vpop.permute.xlu0 %1078  ;;  %v1140_v9 = vrot.slane %v1139_v15, 4 }
 0x486   :  { %v1189_v28 = vrot.slane %v1188_v4, 4  ;;  %v1105_v20 = vmul.f32 %v1651_v52, %v1044_v12  ;;  %v1112_v13 = vmul.f32 %v1664_v59, %v1079_v24  ;;  %v1123_v16 = vrot.slane %v1122_v61, 1 }
 0x487   :  { %v1136_v37 = vadd.f32 %v1135_v7, %v1134_v38  ;;  %v1185_v36 = vadd.f32 %v1184_v17, %v1183_v6  ;;  %v1141_v29 = vadd.f32 %v1140_v9, %v1139_v15  ;;  %v1131_v32 = vadd.f32 %v1130_v46, %v1129_v14 }
 0x488   :  { %v1190_v27 = vadd.f32 %v1189_v28, %v1188_v4  ;;  %v1146_v42 = vsel %vm1117_vm10, %v1105_v20, 0.0  ;;  %v1195_v31 = vsel %vm1117_vm10, %v1112_v13, 0.0  ;;  %v1124_v40 = vadd.f32 %v1123_v16, %v1122_v61 }
 0x489   :  { %v1137_v18 = vrot.slane %v1136_v37, 1  ;;  %v1186_v5 = vrot.slane %v1185_v36, 1  ;;  %v1049_v2 = vpop.permute.xlu1 %1048  ;;  %v1084_v19 = vpop.permute.xlu0 %1083  ;;  %v1142_v21 = vrot.slane %v1141_v29, 2  ;;  %v1147_v33 = vrot.slane %v1146_v42, 4 }
 0x48a   :  { %v1191_v23 = vrot.slane %v1190_v27, 2  ;;  %v1196_v8 = vrot.slane %v1195_v31, 4  ;;  %v1106_v30 = vmul.f32 %v1652_v25, %v1049_v2  ;;  %v1231_v63 = vpack.c.bf16 %v1131_v32, %v1131_v32 }
 0x48b   :  { %v1143_v26 = vadd.f32 %v1142_v21, %v1141_v29  ;;  %v1148_v45 = vadd.f32 %v1147_v33, %v1146_v42  ;;  %v1138_v34 = vadd.f32 %v1137_v18, %v1136_v37  ;;  %v1187_v56 = vadd.f32 %v1186_v5, %v1185_v36 }
 0x48c   :  { %v1192_v44 = vadd.f32 %v1191_v23, %v1190_v27  ;;  %v1197_v47 = vadd.f32 %v1196_v8, %v1195_v31  ;;  %v1153_v58 = vsel %vm1117_vm10, %v1106_v30, 0.0  ;;  %v1113_v49 = vmul.f32 %v1667_v43, %v1084_v19 }
 0x48d   :  { %v1064_v51 = vpop.permute.xlu1 %1063  ;;  %v1089_v54 = vpop.permute.xlu0 %1088  ;;  %v1144_v57 = vrot.slane %v1143_v26, 1  ;;  %v1230_v62 = vpack.c.bf16 %v1124_v40, %v1124_v40  ;;  %v1149_v1 = vrot.slane %v1148_v45, 2  ;;  %v1154_v3 = vrot.slane %v1153_v58, 4 }
 0x48e   :  { %v1193_v39 = vrot.slane %v1192_v44, 1  ;;  %v1198_v22 = vrot.slane %v1197_v47, 2  ;;  %v1202_v55 = vsel %vm1117_vm10, %v1113_v49, 0.0  ;;  %v1109_v52 = vmul.f32 %v1659_v50, %v1064_v51 }
 0x48f   :  { %v1672_v14 = vunpack.c.h.bf16 %v2608_v48  ;;  %v2617_v61 = vunpack.c.l.b16 %v1231_v63  ;;  %v1232_v38 = vpack.c.bf16 %v1138_v34, %v1138_v34  ;;  %v1239_v6 = vpack.c.bf16 %v1187_v56, %v1187_v56 }
 0x490   :  { %v1145_v15 = vadd.f32 %v1144_v57, %v1143_v26  ;;  %v1155_v4 = vadd.f32 %v1154_v3, %v1153_v58  ;;  %v1203_v46 = vrot.slane %v1202_v55, 4  ;;  %v1174_v7 = vsel %vm1117_vm10, %v1109_v52, 0.0 }
 0x491   :  { %v1054_v59 = vpop.permute.xlu1 %1053  ;;  %v1114_v17 = vmul.f32 %v1668_v53, %v1089_v54  ;;  %v1094_v12 = vpop.permute.xlu0 %1093  ;;  %v2620_v24 = vunpack.c.l.b16 %v1230_v62  ;;  %v1194_v9 = vadd.f32 %v1193_v39, %v1192_v44  ;;  %v1150_v28 = vadd.f32 %v1149_v1, %v1148_v45 }
 0x492   :  { %v1199_v20 = vadd.f32 %v1198_v22, %v1197_v47  ;;  %v1156_v13 = vrot.slane %v1155_v4, 2  ;;  %v1204_v16 = vadd.f32 %v1203_v46, %v1202_v55  ;;  %v1175_v37 = vrot.slane %v1174_v7, 4 }
 0x493   :  { %v1209_v36 = vsel %vm1117_vm10, %v1114_v17, 0.0  ;;  %v2623_v29 = vunpack.c.l.b16 %v1232_v38  ;;  %v2625_v27 = vunpack.c.l.b16 %v1239_v6  ;;  %v1233_v42 = vpack.c.bf16 %v1145_v15, %v1145_v15 }
 0x494   :  { %v1210_v31 = vrot.slane %v1209_v36, 4  ;;  %v1157_v35 = vadd.f32 %v1156_v13, %v1155_v4  ;;  %v1205_v32 = vrot.slane %v1204_v16, 2  ;;  %v1176_v18 = vadd.f32 %v1175_v37, %v1174_v7 }
 0x495   :  { %v1107_v5 = vmul.f32 %v1655_v11, %v1054_v59  ;;  %v1059_v25 = vpop.permute.xlu1 %1058  ;;  %v1240_v2 = vpack.c.bf16 %v1194_v9, %v1194_v9  ;;  %v1151_v19 = vrot.slane %v1150_v28, 1  ;;  %v1115_v23 = vmul.f32 %v1671_v60, %v1094_v12  ;;  %v1099_v43 = vpop.permute.xlu0 %1098 }
 0x496   :  { %v1211_v21 = vadd.f32 %v1210_v31, %v1209_v36  ;;  %v1200_v33 = vrot.slane %v1199_v20, 1  ;;  %v1206_v8 = vadd.f32 %v1205_v32, %v1204_v16  ;;  %v1177_v41 = vrot.slane %v1176_v18, 2 }
 0x497   :  { %v1160_v40 = vsel %vm1117_vm10, %v1107_v5, 0.0  ;;  %v1216_v45 = vsel %vm1117_vm10, %v1115_v23, 0.0  ;;  %v1108_v47 = vmul.f32 %v1656_v10, %v1059_v25  ;;  %v1158_v48 = vrot.slane %v1157_v35, 1 }
 0x498   :  { %v1212_v26 = vrot.slane %v1211_v21, 2  ;;  %v1161_v44 = vrot.slane %v1160_v40, 4  ;;  %v1207_v30 = vrot.slane %v1206_v8, 1  ;;  %v1178_v50 = vadd.f32 %v1177_v41, %v1176_v18 }
 0x499   :  { %v1217_v51 = vrot.slane %v1216_v45, 4  ;;  %v1167_v11 = vsel %vm1117_vm10, %v1108_v47, 0.0  ;;  %v1116_v63 = vmul.f32 %v1672_v14, %v1099_v43  ;;  %v1270_v34 = vunpack.c.l.b16 %v1233_v42 }
 0x49a   :  { %v1213_v53 = vadd.f32 %v1212_v26, %v1211_v21  ;;  %v1162_v54 = vadd.f32 %v1161_v44, %v1160_v40  ;;  %v1201_v56 = vadd.f32 %v1200_v33, %v1199_v20  ;;  %v1179_v57 = vrot.slane %v1178_v50, 1 }
 0x49b   :  { %v1218_v58 = vadd.f32 %v1217_v51, %v1216_v45  ;;  %v1168_v62 = vrot.slane %v1167_v11, 4  ;;  %v1223_v39 = vsel %vm1117_vm10, %v1116_v63, 0.0  ;;  %v1152_v1 = vadd.f32 %v1151_v19, %v1150_v28 }
 0x49c   :  { %v1214_v49 = vrot.slane %v1213_v53, 1  ;;  %v1163_v60 = vrot.slane %v1162_v54, 2  ;;  %v1208_v10 = vadd.f32 %v1207_v30, %v1206_v8  ;;  %v1180_v22 = vadd.f32 %v1179_v57, %v1178_v50 }
 0x49d   :  { %v1219_v3 = vrot.slane %v1218_v58, 2  ;;  %v1159_v55 = vadd.f32 %v1158_v48, %v1157_v35  ;;  %v1169_v59 = vadd.f32 %v1168_v62, %v1167_v11  ;;  %v1224_v38 = vrot.slane %v1223_v39, 4 }
 0x49e   :  { %v1164_v52 = vadd.f32 %v1163_v60, %v1162_v54  ;;  %v1241_v6 = vpack.c.bf16 %v1201_v56, %v1201_v56  ;;  %v1238_v15 = vpack.c.bf16 %v1180_v22, %v1180_v22  ;;  %v1215_v14 = vadd.f32 %v1214_v49, %v1213_v53  ;;  %v1760_v49 = vld [vmem:[#allocation3] sm:$0xff]   ;;  %v1302_v60 = vpop.permute.xlu0 %1301 }
 0x49f   :  { %v1220_v4 = vadd.f32 %v1219_v3, %v1218_v58  ;;  %v1277_v46 = vunpack.c.l.b16 %v1240_v2  ;;  %v1170_v17 = vrot.slane %v1169_v59, 2  ;;  %v1225_v12 = vadd.f32 %v1224_v38, %v1223_v39 }
 0x4a0   :  { %v1165_v7 = vrot.slane %v1164_v52, 1  ;;  %v1234_v9 = vpack.c.bf16 %v1152_v1, %v1152_v1  ;;  %v1242_v20 = vpack.c.bf16 %v1208_v10, %v1208_v10  ;;  %v1275_v13 = vunpack.c.l.b16 %v1238_v15  ;;  %v1626_v10 = vld [vmem:[%s2739_s8] ss:$0 sm:$0xff]  ;;  %s2074_s8 = smov 96  }
 0x4a1   :  { %v1221_v16 = vrot.slane %v1220_v4, 1  ;;  %v1235_v28 = vpack.c.bf16 %v1159_v55, %v1159_v55  ;;  %v1171_v36 = vadd.f32 %v1170_v17, %v1169_v59  ;;  %v1226_v42 = vrot.slane %v1225_v12, 2  ;;  %v132_v15 = vld [vmem:[#allocation8] sm:$0xff] }
 0x4a2   :  { %v1166_v37 = vadd.f32 %v1165_v7, %v1164_v52  ;;  %v1278_v31 = vunpack.c.l.b16 %v1241_v6  ;;  %v1290_v35 = vsel %vm595_vm2, %v2625_v27, %v1275_v13  ;;  %v1243_v32 = vpack.c.bf16 %v1215_v14, %v1215_v14 }
 0x4a3   :  { %v1222_v18 = vadd.f32 %v1221_v16, %v1220_v4  ;;  %v1291_v5 = vsel %vm597_vm3, %v1277_v46, %v1290_v35  ;;  %v1172_v2 = vrot.slane %v1171_v36, 1  ;;  %v1227_v19 = vadd.f32 %v1226_v42, %v1225_v12  ;;  %v133_v4 = vld [vmem:[#allocation8 + $0x8] sm:$0xff] }
 0x4a4   :  { %v1236_v25 = vpack.c.bf16 %v1166_v37, %v1166_v37  ;;  %v1271_v21 = vunpack.c.l.b16 %v1234_v9  ;;  %v1279_v23 = vunpack.c.l.b16 %v1242_v20  ;;  %v1292_v8 = vsel %vm599_vm4, %v1278_v31, %v1291_v5 }
 0x4a5   :  { %v1244_v33 = vpack.c.bf16 %v1222_v18, %v1222_v18  ;;  %v1283_v41 = vsel %vm595_vm2, %v2617_v61, %v2620_v24  ;;  %v1272_v40 = vunpack.c.l.b16 %v1235_v28  ;;  %v1173_v43 = vadd.f32 %v1172_v2, %v1171_v36 }
 0x4a6   :  { %v1228_v26 = vrot.slane %v1227_v19, 1  ;;  %v1284_v27 = vsel %vm597_vm3, %v2623_v29, %v1283_v41  ;;  %v1273_v44 = vunpack.c.l.b16 %v1236_v25  ;;  %v1293_v45 = vsel %vm601_vm5, %v1279_v23, %v1292_v8  ;;  %v1762_v8 = vld [vmem:[%s2740_s9 + $0x8] sm:$0xff]  }
 0x4a7   :  { %v1285_v47 = vsel %vm599_vm4, %v1270_v34, %v1284_v27  ;;  %v1280_v48 = vunpack.c.l.b16 %v1243_v32  ;;  %v1237_v30 = vpack.c.bf16 %v1173_v43, %v1173_v43  ;;  %v1281_v51 = vunpack.c.l.b16 %v1244_v33  ;;  %v1761_v33 = vld [vmem:[%s2740_s9] sm:$0xff]   ;;  %s2075_s9 = smov [#allocation15]  }
 0x4a8   :  { %v1229_v50 = vadd.f32 %v1228_v26, %v1227_v19  ;;  %v1286_v53 = vsel %vm601_vm5, %v1271_v21, %v1285_v47  ;;  %1721 = vmatpush3.bf16.msra.mxu0 %v1761_v33 }
 0x4a9   :  { %v1274_v54 = vunpack.c.l.b16 %v1237_v30  ;;  %v1287_v61 = vsel %vm603_vm6, %v1272_v40, %v1286_v53  ;;  %v1294_v24 = vsel %vm603_vm6, %v1280_v48, %v1293_v45  ;;  %1722 = vmatprep.subr.bf16.mxu0 %v2067_v0 }
 0x4aa   :  { %v1245_v11 = vpack.c.bf16 %v1229_v50, %v1229_v50  ;;  %v1288_v63 = vsel %vm605_vm7, %v1273_v44, %v1287_v61  ;;  %v1295_v57 = vsel %vm605_vm7, %v1281_v51, %v1294_v24 }
 0x4ab   :  { %v1289_v56 = vsel %vm607_vm8, %v1274_v54, %v1288_v63 }
 0x4ac   :  { %v1282_v29 = vunpack.c.l.b16 %v1245_v11  ;;  %1723 = vmatpush3.bf16.msra.mxu0 %v1762_v8 }
 0x4ae   :  { %v1296_v34 = vsel %vm607_vm8, %v1282_v29, %v1295_v57 }
 0x4af   :  { %v1297_v58 = vpack.c.b16 %v1296_v34, %v1289_v56 }
 0x4b1   :  { %1298 = vrot.lane.b32.xlu1 %v1297_v58, %s2072_s28 }
 0x523   :  { %v1299_v62 = vpop.permute.xlu1 %1298 }
 0x524   :  { %v1306_v39 = vsel %vm1303_vm11, %v1760_v49, %v1299_v62 }
 0x525   :  { %v1309_v1 = vsel %vm1307_vm12, %v1306_v39, %v1302_v60 }
 0x526   :  { %1717 = vmatmul.mubr.msk.bf16.vlgmr.msra.gmra.mrb[0].mxu1 %vm1373_vm13, %v1309_v1 }
 0x5f9   :  { %v1410_v22 = vpop.f32.mrb[0].mxu1 }
 0x5fa   :  { %v1411_v3 = vadd.f32 %v1626_v10, %v1410_v22  ;;  %v1718_v55 = vpop.f32.mrb[1].mxu1 }
 0x5fb   :  { %v1413_v52 = vpop.f32.mrb[2].mxu1 }
 0x5fc   :  { %1831 = vtanh.f32 %v1411_v3  ;;  %v1414_v59 = vadd.f32 %v1626_v10, %v1413_v52  ;;  %v1719_v38 = vpop.f32.mrb[3].mxu1  ;;  %v1635_v46 = vmul.f32 -1.442695, %v1411_v3 }
 0x5fe   :  { %1833 = vtanh.f32 %v1414_v59  ;;  %v1636_v7 = vmul.f32 -1.442695, %v1414_v59 }
 0x5ff   :  { %1835 = vpow2.f32 %v1635_v46 }
 0x600   :  { %1837 = vpow2.f32 %v1636_v7 }
 0x606   :  { %v1832_v6 = vpop.eup %1831 }
 0x607   :  { %1443 = vrot.lane.b32.xlu1 %v1832_v6, %s2062_s26 }
 0x608   :  { %v1834_v14 = vpop.eup %1833 }
 0x609   :  { %1445 = vrot.lane.b32.xlu0 %v1834_v14, %s2062_s26  ;;  %v1836_v17 = vpop.eup %1835 }
 0x60a   :  { %v1838_v12 = vpop.eup %1837  ;;  %v1423_v9 = vadd.f32 1.0, %v1836_v17 }
 0x60b   :  { %1433 = vrot.lane.b32.xlu1 %v132_v15, %s2073_s29  ;;  %v1424_v20 = vadd.f32 1.0, %v1838_v12 }
 0x60c   :  { %1839 = vrcp.f32 %v1423_v9 }
 0x60d   :  { %1435 = vrot.lane.b32.xlu0 %v133_v4, %s2073_s29  ;;  %1841 = vrcp.f32 %v1424_v20 }
 0x616   :  { %v1840_v13 = vpop.eup %1839 }
 0x617   :  { %v1842_v37 = vpop.eup %1841 }
 0x679   :  { %v1444_v16 = vpop.permute.xlu1 %1443 }
 0x67a   :  { %v1449_v28 = vmul.f32 %v1840_v13, %v1444_v16 }
 0x67b   :  { %v1446_v36 = vpop.permute.xlu0 %1445 }
 0x67c   :  { %1453 = vrot.lane.b32.xlu1 %v1449_v28, %s2073_s29  ;;  %v1450_v42 = vmul.f32 %v1842_v37, %v1446_v36 }
 0x67d   :  { %v1434_v31 = vpop.permute.xlu1 %1433 }
 0x67e   :  { %1455 = vrot.lane.b32.xlu0 %v1450_v42, %s2073_s29  ;;  %v1439_v35 = vmul.f32 %v1840_v13, %v1434_v31 }
 0x67f   :  { %v1436_v32 = vpop.permute.xlu0 %1435 }
 0x680   :  { %v1440_v25 = vmul.f32 %v1842_v37, %v1436_v32 }
 0x6ee   :  { %v1454_v18 = vpop.permute.xlu1 %1453 }
 0x6ef   :  { %v1459_v5 = vadd.f32 %v1454_v18, %v1439_v35 }
 0x6f0   :  { %v1456_v2 = vpop.permute.xlu0 %1455 }
 0x6f1   :  { %1843 = vtanh.f32 %v1459_v5  ;;  %v1460_v19 = vadd.f32 %v1456_v2, %v1440_v25 }
 0x6f3   :  { %1845 = vtanh.f32 %v1460_v19 }
 0x6fb   :  { %v1844_v21 = vpop.eup %1843 }
 0x6fc   :  { %1465 = vrot.lane.b32.xlu1 %v1844_v21, %s2062_s26 }
 0x6fd   :  { %v1846_v23 = vpop.eup %1845 }
 0x6fe   :  { %1467 = vrot.lane.b32.xlu0 %v1846_v23, %s2062_s26  ;;  %s1587_s26 = sshll.u32 %s2075_s9, 4  ;;  %s1588_s26 = int_to_ptr.vmem [resolvable:$true] %s1587_s26 }
 0x6ff   :  { %s1979_s23 = scalar_lea.vmem %s1588_s26, 256  ;;  %p1984_p7 = scmp.lt.s32.totalorder %s1588_s26, %s1588_s26 }
 0x700   :  { %p1980_p6 = scmp.ne.s32.totalorder %s1588_s26, %s1979_s23  ;;  %p1985_p8 = scmp.lt.s32.totalorder %s1979_s23, %s1979_s23 }
 0x702   :  { %1485 = vrot.lane.b32.xlu0 %v1459_v5, %s2074_s8  ;;  %p1986_p9 = por %p1985_p8, %p1984_p7 }
 0x704   :  { %p1987_p10 = pnand %p1986_p9, %p1980_p6 }
 0x76e   :  { %v1466_v41 = vpop.permute.xlu1 %1465 }
 0x76f   :  { %v1471_v40 = vmul.f32 %v1840_v13, %v1466_v41 }
 0x770   :  { %v1468_v43 = vpop.permute.xlu0 %1467 }
 0x771   :  { %1475 = vrot.lane.b32.xlu0 %v1471_v40, %s2073_s29  ;;  %v1472_v26 = vmul.f32 %v1842_v37, %v1468_v43 }
 0x773   :  { %v1493_v27 = vpack.c.bf16 %v1472_v26, %v1471_v40 }
 0x774   :  { %v1486_v44 = vpop.permute.xlu0 %1485 }
 0x775   :  { %1491 = vst.msk [vmem:[#allocation15] sm:$0xff] %vm185_vm1, %v1486_v44  ;;  %1495 = vrot.lane.b32.xlu1 %v1493_v27, %s2073_s29 }
 0x779   :  { %1487 = vrot.lane.b32.xlu1 %v1460_v19, %s2074_s8 }
 0x77d   :  { %1477 = vrot.lane.b32.xlu1 %v1472_v26, %s2073_s29 }
 0x7e3   :  { %v1476_v0 = vpop.permute.xlu0 %1475 }
 0x7e4   :  { %1481 = vst.msk [vmem:[#allocation14] sm:$0xff] %vm185_vm1, %v1476_v0 }
 0x7e7   :  { %v1496_v45 = vpop.permute.xlu1 %1495 }
 0x7e8   :  { %1498 = vst.msk [vmem:[#allocation2] sm:$0xff] %vm185_vm1, %v1496_v45 }
 0x7eb   :  { %v1488_v47 = vpop.permute.xlu1 %1487 }
 0x7ec   :  { %1492 = vst.msk [vmem:[#allocation15 + $0x8] sm:$0xff] %vm185_vm1, %v1488_v47 }
 0x7ef   :  { %v1478_v48 = vpop.permute.xlu1 %1477  ;;  %v1499_v30 = vld [vmem:[#allocation2] sm:$0xff] }
 0x7f0   :  { %1482 = vst.msk [vmem:[#allocation14 + $0x8] sm:$0xff] %vm185_vm1, %v1478_v48  ;;  %1725 = vmatmul.mubr.msk.bf16.vlgmr.msra.gmra.mrb[4].mxu0 %vm185_vm1, %v1499_v30 }
 0x7f1   :  { %1990 = shalt.err (!%p1987_p10)
}
 0x7f2   :  { %s1991_s4 = scalar_lea.hbm %s2743_s12, 256 }
 0x7f3   :  { %p1992_p11 = scmp.ne.s32.totalorder %s2743_s12, %s1991_s4  ;;  %p1995_p12 = scmp.lt.u32.totalorder %s1991_s4, %s2743_s12 }
 0x7f5   :  { %p1997_p13 = pnand %p1995_p12, %p1992_p11 }
 0x7f7   :  { %2000 = shalt.err (!%p1997_p13)
}
 0x7f8   :  { %1593 = dma.vmem_to_hbm [thread:$0]  %s1588_s26, 256, %s2743_s12, [#allocation16], %s2058_s18, %s2058_s18, %s2059_s19  }
 0x7f9   :  { %s2001_s27 = scalar_lea.vmem %s2676_s3, 256  ;;  %p2006_p1 = scmp.lt.s32.totalorder %s2676_s3, %s2676_s3 }
 0x7fa   :  { %p2002_p0 = scmp.ne.s32.totalorder %s2676_s3, %s2001_s27  ;;  %p2007_p2 = scmp.lt.s32.totalorder %s2001_s27, %s2001_s27 }
 0x7fc   :  { %p2008_p3 = por %p2007_p2, %p2006_p1 }
 0x7fe   :  { %p2009_p4 = pnand %p2008_p3, %p2002_p0 }
 0x800   :  { %2012 = shalt.err (!%p2009_p4)
}
 0x801   :  { %s2013_s2 = scalar_lea.hbm %s2742_s11, 256 }
 0x802   :  { %p2014_p5 = scmp.ne.s32.totalorder %s2742_s11, %s2013_s2  ;;  %p2017_p6 = scmp.lt.u32.totalorder %s2013_s2, %s2742_s11 }
 0x804   :  { %p2019_p7 = pnand %p2017_p6, %p2014_p5 }
 0x806   :  { %2022 = shalt.err (!%p2019_p7)
}
 0x807   :  { %1581 = dma.vmem_to_hbm [thread:$0]  %s2676_s3, 256, %s2742_s11, [#allocation5], %s2058_s18, %s2058_s18, %s2059_s19  }
 0x808   :  { %v1637_v50 = vld [vmem:[%s2741_s10] ss:$0 sm:$0xff]  ;;  %s2077_s9 = smov [#allocation17]  }
 0x809   :  { %s1599_s26 = sshll.u32 %s2077_s9, 4  ;;  %s1600_s26 = int_to_ptr.vmem [resolvable:$true] %s1599_s26 }
 0x80a   :  { %s2023_s15 = scalar_lea.vmem %s1600_s26, 256  ;;  %p2028_p9 = scmp.lt.s32.totalorder %s1600_s26, %s1600_s26 }
 0x80b   :  { %p2024_p8 = scmp.ne.s32.totalorder %s1600_s26, %s2023_s15  ;;  %p2029_p10 = scmp.lt.s32.totalorder %s2023_s15, %s2023_s15 }
 0x80d   :  { %p2030_p11 = por %p2029_p10, %p2028_p9 }
 0x80f   :  { %p2031_p12 = pnand %p2030_p11, %p2024_p8 }
 0x8c3   :  { %v1561_v51 = vpop.f32.mrb[4].mxu0 }
 0x8c4   :  { %v1562_v53 = vadd.f32 %v1637_v50, %v1561_v51  ;;  %v1726_v54 = vpop.f32.mrb[5].mxu0 }
 0x8c5   :  { %v1564_v11 = vpop.f32.mrb[6].mxu0 }
 0x8c6   :  { %1568 = vst [vmem:[#allocation17] sm:$0xff] %v1562_v53  ;;  %v1565_v61 = vadd.f32 %v1637_v50, %v1564_v11  ;;  %v1727_v24 = vpop.f32.mrb[7].mxu0 }
 0x8c8   :  { %1569 = vst [vmem:[#allocation17 + $0x8] sm:$0xff] %v1565_v61 }
 0x8c9   :  { %2034 = shalt.err (!%p2031_p12)
}
 0x8ca   :  { %s2035_s3 = scalar_lea.hbm %s2744_s13, 256 }
 0x8cb   :  { %p2036_p13 = scmp.ne.s32.totalorder %s2744_s13, %s2035_s3  ;;  %p2039_p0 = scmp.lt.u32.totalorder %s2035_s3, %s2744_s13 }
 0x8cd   :  { %p2041_p1 = pnand %p2039_p0, %p2036_p13 }
 0x8cf   :  { %2044 = shalt.err (!%p2041_p1)
}
 0x8d0   :  { %1605 = dma.vmem_to_hbm [thread:$0]  %s1600_s26, 256, %s2744_s13, [#allocation16], %s2058_s18, %s2058_s18, %s2059_s19  }
 0x8d1   :  { %2053 = dma.done.wait [#allocation5], 256  }
 0x8d2   :  { %2054 = vsyncadd [#allocation5], 4294967040 }
 0x8d3   :  { %2055 = dma.done.wait [#allocation16], 512  }
 0x8d4   :  { %2056 = vsyncadd [#allocation16], 4294966784 }
 0x8d5   :  { %1615 = vsyncpa [#allocation4], 1 }
 0x8d6   :  { %1616 = vsyncpa [#allocation7], 1 }
 0x8d7   :  { %1617 = vsyncpa [#allocation10], 1 }
 0x8d8   :  { %1618 = vsyncpa [#allocation13], 1 }
 0x8d9   :  { %1619 = vsyncpa [#allocation5], 1 }
 0x8da   :  { %1620 = vsyncpa [#allocation16], 1 }

</bundles_post_ra>
